<compile_context>
chip_gen: v7x
topology: tpu7x:2x2x1
jax: 0.10.0
libtpu: 0.0.40
codegen_flags: <defaults>
</compile_context>

<pallas_src>
import functools

import jax
import jax.numpy as jnp
from jax.experimental import pallas as pl
from jax.experimental.pallas import tpu as pltpu

NEG_SLOPE = 0.01   # nn.LeakyReLU default
BN_EPS = 1e-5      # nn.BatchNorm1d default
HIDDEN = [500, 400, 300, 200, 100, 50]
LANE = 128
NEG_BIG = -1e30    # folded into the last bias to mask padded logit columns

# Vector-slab row layout (rows of the (VEC_ROWS, max_width) f32 slab).
VEC_BIAS_ROW0 = 0
VEC_GAMMA_ROW0 = 8
VEC_BETA_ROW0 = 16
VEC_ROWS = 24


def _round_up(n, m=LANE):
    return ((n + m - 1) // m) * m


def mlp_kernel(x_ref, w_ref, v_ref, o_ref, *, layout):
    """Whole forward pass in one invocation; all operands resident in VMEM.

    layout: static tuple of (row_offset, k_pad, n_pad) per layer into the weight slab.
    """
    n_layers = len(layout)
    h = x_ref[...].astype(jnp.float32)

    for i, (row0, kp, np_) in enumerate(layout):
        w = w_ref[row0:row0 + kp, :np_]                        # bf16 tile, static slice
        b = v_ref[VEC_BIAS_ROW0 + i:VEC_BIAS_ROW0 + i + 1, :np_]
        # bf16 MXU inputs, f32 accumulation.
        h = jnp.dot(h.astype(jnp.bfloat16), w,
                    preferred_element_type=jnp.float32) + b
        if i < n_layers - 1:
            h = jnp.maximum(h, NEG_SLOPE * h)                  # LeakyReLU
            g = v_ref[VEC_GAMMA_ROW0 + i:VEC_GAMMA_ROW0 + i + 1, :np_]
            be = v_ref[VEC_BETA_ROW0 + i:VEC_BETA_ROW0 + i + 1, :np_]
            # Training-mode BatchNorm1d: single-pass batch stats + one FMA.
            # TODO(synk): fuse the two reductions into one XLU pass (lane-concat of
            # h and h*h) or use inference-mode BN with precomputed scale/shift.
            inv_b = 1.0 / h.shape[0]
            mu = jnp.sum(h, axis=0, keepdims=True) * inv_b
            ex2 = jnp.sum(h * h, axis=0, keepdims=True) * inv_b
            var = jnp.maximum(ex2 - mu * mu, 0.0)              # biased batch variance
            scale = g * jax.lax.rsqrt(var + BN_EPS)
            shift = be - mu * scale
            h = h * scale + shift

    # Padded logit columns already hold NEG_BIG (mask folded into the last bias).
    m = jnp.max(h, axis=-1, keepdims=True)
    e = jnp.exp(h - m)
    # Exact divide so softmax rows sum to 1 (approx reciprocal was not enough).
    o_ref[...] = e / jnp.sum(e, axis=-1, keepdims=True)


def pack_params(params, input_size):
    """One-time packing: pad + bf16-cast weights into one slab, vectors into another."""
    n = len(params)
    assert n <= 8, "vector-slab row layout assumes <= 8 layers"
    max_np = max(_round_up(p["w"].shape[1]) for p in params)

    layout = []
    w_blocks = []
    vec = jnp.zeros((VEC_ROWS, max_np), jnp.float32)
    prev_pad = _round_up(input_size)
    row = 0
    for i, p in enumerate(params):
        fi, fo = p["w"].shape
        kp, np_ = prev_pad, _round_up(fo)
        w_blocks.append(
            jnp.zeros((kp, max_np), jnp.float32).at[:fi, :fo].set(p["w"]))
        b_row = jnp.zeros((max_np,), jnp.float32)
        if i == n - 1:
            # Fold the padded-logit softmax mask into the last bias.
            b_row = b_row.at[fo:np_].set(NEG_BIG)
        b_row = b_row.at[:fo].set(p["b"][0])
        vec = vec.at[VEC_BIAS_ROW0 + i].set(b_row)
        if i < n - 1:
            # Padded gamma/beta lanes stay 0 so padded activations are inert.
            vec = vec.at[VEC_GAMMA_ROW0 + i, :fo].set(p["gamma"][0])
            vec = vec.at[VEC_BETA_ROW0 + i, :fo].set(p["beta"][0])
        layout.append((row, kp, np_))
        row += kp
        prev_pad = np_

    w_slab = jnp.concatenate(w_blocks, axis=0).astype(jnp.bfloat16)
    return w_slab, vec, tuple(layout)


@functools.partial(jax.jit, static_argnames=("layout", "out_size"))
def image_classifier_forward(x, w_slab, vec_slab, *, layout, out_size):
    """Per-call path: pad x, one pallas_call, slice the real logit columns."""
    batch, in_size = x.shape
    in_pad = layout[0][1]
    out_pad = layout[-1][2]
    x_p = jnp.zeros((batch, in_pad), jnp.float32).at[:, :in_size].set(
        x.astype(jnp.float32))

    vmem = pl.BlockSpec(memory_space=pltpu.MemorySpace.VMEM)
    out_p = pl.pallas_call(
        functools.partial(mlp_kernel, layout=layout),
        out_shape=jax.ShapeDtypeStruct((batch, out_pad), jnp.float32),
        in_specs=[vmem, vmem, vmem],
        out_specs=vmem,
    )(x_p, w_slab, vec_slab)
    return out_p[:, :out_size]


def init_params(key, input_size, output_size):
    """Deterministic synthetic parameters with the module's shapes (all f32)."""
    sizes = [input_size] + HIDDEN + [output_size]
    params = []
    for i in range(len(sizes) - 1):
        fan_in, fan_out = sizes[i], sizes[i + 1]
        key, kw, kb, kg, kbe = jax.random.split(key, 5)
        w = jax.random.normal(kw, (fan_in, fan_out), jnp.float32) / jnp.sqrt(float(fan_in))
        b = 0.01 * jax.random.normal(kb, (1, fan_out), jnp.float32)
        layer = {"w": w, "b": b}
        if i < len(sizes) - 2:  # BatchNorm follows every Linear except the last one
            layer["gamma"] = 1.0 + 0.1 * jax.random.normal(kg, (1, fan_out), jnp.float32)
            layer["beta"] = 0.1 * jax.random.normal(kbe, (1, fan_out), jnp.float32)
        params.append(layer)
    return params


def reference_forward(x, params):
    """Pure-JAX reference mirroring the kernel's numerics (bf16 matmul inputs, f32 math)."""
    h = x.astype(jnp.float32)
    n = len(params)
    for i, p in enumerate(params):
        h = jnp.dot(h.astype(jnp.bfloat16), p["w"].astype(jnp.bfloat16),
                    preferred_element_type=jnp.float32) + p["b"]
        if i < n - 1:
            h = jnp.maximum(h, NEG_SLOPE * h)
            mu = jnp.mean(h, axis=0, keepdims=True)
            var = jnp.maximum(jnp.mean(h * h, axis=0, keepdims=True) - mu * mu, 0.0)
            h = (h - mu) * jax.lax.rsqrt(var + BN_EPS) * p["gamma"] + p["beta"]
    return jax.nn.softmax(h, axis=-1)


if __name__ == "__main__":
    INPUT_SIZE = 64
    OUTPUT_SIZE = 10
    BATCH = 8

    key = jax.random.PRNGKey(0)
    key, kx = jax.random.split(key)
    x = jax.random.normal(kx, (BATCH, INPUT_SIZE), jnp.float32)
    params = init_params(key, INPUT_SIZE, OUTPUT_SIZE)

    # One-time packing (hoisted out of the per-call path, static across calls).
    w_slab, vec_slab, layout = pack_params(params, INPUT_SIZE)
    w_slab, vec_slab = jax.block_until_ready((w_slab, vec_slab))

    out = image_classifier_forward(x, w_slab, vec_slab,
                                   layout=layout, out_size=OUTPUT_SIZE)
    out = jax.block_until_ready(out)
    ref = jax.block_until_ready(reference_forward(x, params))

    assert out.shape == (BATCH, OUTPUT_SIZE)
    assert bool(jnp.all(out >= 0.0))
    assert bool(jnp.allclose(jnp.sum(out, axis=-1), 1.0, atol=1e-3))
    assert bool(jnp.allclose(out, ref, atol=5e-3))

    print("KERNEL_OK")
</pallas_src>

<mosaic_0001>
module attributes {stable_mosaic.version = 11 : i64} {
  func.func @mlp_kernel(%arg0: memref<8x128xf32, #tpu.memory_space<vmem>>, %arg1: memref<2048x512xbf16, #tpu.memory_space<vmem>>, %arg2: memref<24x512xf32, #tpu.memory_space<vmem>>, %arg3: memref<8x128xf32, #tpu.memory_space<vmem>>) attributes {dimension_semantics = [], scalar_prefetch = 0 : i64, scratch_operands = 0 : i64, tpu.core_type = #tpu.core_type<tc>} {
    %c0 = arith.constant 0 : index
    %c0_0 = arith.constant 0 : index
    %0 = vector.load %arg0[%c0, %c0_0] : memref<8x128xf32, #tpu.memory_space<vmem>>, vector<8x128xf32>
    %c0_1 = arith.constant 0 : index
    %c0_2 = arith.constant 0 : index
    %1 = vector.load %arg1[%c0_1, %c0_2] : memref<2048x512xbf16, #tpu.memory_space<vmem>>, vector<128x512xbf16>
    %c0_3 = arith.constant 0 : index
    %c0_4 = arith.constant 0 : index
    %2 = vector.load %arg2[%c0_3, %c0_4] : memref<24x512xf32, #tpu.memory_space<vmem>>, vector<1x512xf32>
    %3 = arith.truncf %0 : vector<8x128xf32> to vector<8x128xbf16>
    %cst = arith.constant dense<0.000000e+00> : vector<8x512xf32>
    %4 = tpu.matmul %3, %1, %cst {dimension_numbers = #tpu.dot_dimension_numbers<[1], [0], [0], [1], [0, 0, 1, 1], [], []>} : vector<8x128xbf16>, vector<128x512xbf16>, vector<8x512xf32> -> vector<8x512xf32>
    %5 = vector.broadcast %2 : vector<1x512xf32> to vector<8x512xf32>
    %6 = arith.addf %4, %5 : vector<8x512xf32>
    %cst_5 = arith.constant 0.00999999977 : f32
    %7 = vector.broadcast %cst_5 : f32 to vector<8x512xf32>
    %8 = arith.mulf %7, %6 : vector<8x512xf32>
    %9 = arith.maximumf %6, %8 : vector<8x512xf32>
    %c8 = arith.constant 8 : index
    %c0_6 = arith.constant 0 : index
    %10 = vector.load %arg2[%c8, %c0_6] : memref<24x512xf32, #tpu.memory_space<vmem>>, vector<1x512xf32>
    %c16 = arith.constant 16 : index
    %c0_7 = arith.constant 0 : index
    %11 = vector.load %arg2[%c16, %c0_7] : memref<24x512xf32, #tpu.memory_space<vmem>>, vector<1x512xf32>
    %cst_8 = arith.constant dense<0.000000e+00> : vector<512xf32>
    %12 = vector.multi_reduction <add>, %9, %cst_8 [0] : vector<8x512xf32> to vector<512xf32>
    %13 = vector.shape_cast %12 : vector<512xf32> to vector<1x512xf32>
    %cst_9 = arith.constant 1.250000e-01 : f32
    %14 = vector.broadcast %cst_9 : f32 to vector<1x512xf32>
    %15 = arith.mulf %13, %14 : vector<1x512xf32>
    %16 = arith.mulf %9, %9 : vector<8x512xf32>
    %cst_10 = arith.constant dense<0.000000e+00> : vector<512xf32>
    %17 = vector.multi_reduction <add>, %16, %cst_10 [0] : vector<8x512xf32> to vector<512xf32>
    %18 = vector.shape_cast %17 : vector<512xf32> to vector<1x512xf32>
    %cst_11 = arith.constant 1.250000e-01 : f32
    %19 = vector.broadcast %cst_11 : f32 to vector<1x512xf32>
    %20 = arith.mulf %18, %19 : vector<1x512xf32>
    %21 = arith.mulf %15, %15 : vector<1x512xf32>
    %22 = arith.subf %20, %21 : vector<1x512xf32>
    %cst_12 = arith.constant 0.000000e+00 : f32
    %23 = vector.broadcast %cst_12 : f32 to vector<1x512xf32>
    %24 = arith.maximumf %22, %23 : vector<1x512xf32>
    %cst_13 = arith.constant 9.99999974E-6 : f32
    %25 = vector.broadcast %cst_13 : f32 to vector<1x512xf32>
    %26 = arith.addf %24, %25 : vector<1x512xf32>
    %27 = math.rsqrt %26 : vector<1x512xf32>
    %28 = arith.mulf %10, %27 : vector<1x512xf32>
    %29 = arith.mulf %15, %28 : vector<1x512xf32>
    %30 = arith.subf %11, %29 : vector<1x512xf32>
    %31 = vector.broadcast %28 : vector<1x512xf32> to vector<8x512xf32>
    %32 = arith.mulf %9, %31 : vector<8x512xf32>
    %33 = vector.broadcast %30 : vector<1x512xf32> to vector<8x512xf32>
    %34 = arith.addf %32, %33 : vector<8x512xf32>
    %c128 = arith.constant 128 : index
    %c0_14 = arith.constant 0 : index
    %35 = vector.load %arg1[%c128, %c0_14] : memref<2048x512xbf16, #tpu.memory_space<vmem>>, vector<512x512xbf16>
    %c1 = arith.constant 1 : index
    %c0_15 = arith.constant 0 : index
    %36 = vector.load %arg2[%c1, %c0_15] : memref<24x512xf32, #tpu.memory_space<vmem>>, vector<1x512xf32>
    %37 = arith.truncf %34 : vector<8x512xf32> to vector<8x512xbf16>
    %cst_16 = arith.constant dense<0.000000e+00> : vector<8x512xf32>
    %38 = tpu.matmul %37, %35, %cst_16 {dimension_numbers = #tpu.dot_dimension_numbers<[1], [0], [0], [1], [0, 0, 1, 1], [], []>} : vector<8x512xbf16>, vector<512x512xbf16>, vector<8x512xf32> -> vector<8x512xf32>
    %39 = vector.broadcast %36 : vector<1x512xf32> to vector<8x512xf32>
    %40 = arith.addf %38, %39 : vector<8x512xf32>
    %cst_17 = arith.constant 0.00999999977 : f32
    %41 = vector.broadcast %cst_17 : f32 to vector<8x512xf32>
    %42 = arith.mulf %41, %40 : vector<8x512xf32>
    %43 = arith.maximumf %40, %42 : vector<8x512xf32>
    %c9 = arith.constant 9 : index
    %c0_18 = arith.constant 0 : index
    %44 = vector.load %arg2[%c9, %c0_18] : memref<24x512xf32, #tpu.memory_space<vmem>>, vector<1x512xf32>
    %c17 = arith.constant 17 : index
    %c0_19 = arith.constant 0 : index
    %45 = vector.load %arg2[%c17, %c0_19] : memref<24x512xf32, #tpu.memory_space<vmem>>, vector<1x512xf32>
    %cst_20 = arith.constant dense<0.000000e+00> : vector<512xf32>
    %46 = vector.multi_reduction <add>, %43, %cst_20 [0] : vector<8x512xf32> to vector<512xf32>
    %47 = vector.shape_cast %46 : vector<512xf32> to vector<1x512xf32>
    %cst_21 = arith.constant 1.250000e-01 : f32
    %48 = vector.broadcast %cst_21 : f32 to vector<1x512xf32>
    %49 = arith.mulf %47, %48 : vector<1x512xf32>
    %50 = arith.mulf %43, %43 : vector<8x512xf32>
    %cst_22 = arith.constant dense<0.000000e+00> : vector<512xf32>
    %51 = vector.multi_reduction <add>, %50, %cst_22 [0] : vector<8x512xf32> to vector<512xf32>
    %52 = vector.shape_cast %51 : vector<512xf32> to vector<1x512xf32>
    %cst_23 = arith.constant 1.250000e-01 : f32
    %53 = vector.broadcast %cst_23 : f32 to vector<1x512xf32>
    %54 = arith.mulf %52, %53 : vector<1x512xf32>
    %55 = arith.mulf %49, %49 : vector<1x512xf32>
    %56 = arith.subf %54, %55 : vector<1x512xf32>
    %cst_24 = arith.constant 0.000000e+00 : f32
    %57 = vector.broadcast %cst_24 : f32 to vector<1x512xf32>
    %58 = arith.maximumf %56, %57 : vector<1x512xf32>
    %cst_25 = arith.constant 9.99999974E-6 : f32
    %59 = vector.broadcast %cst_25 : f32 to vector<1x512xf32>
    %60 = arith.addf %58, %59 : vector<1x512xf32>
    %61 = math.rsqrt %60 : vector<1x512xf32>
    %62 = arith.mulf %44, %61 : vector<1x512xf32>
    %63 = arith.mulf %49, %62 : vector<1x512xf32>
    %64 = arith.subf %45, %63 : vector<1x512xf32>
    %65 = vector.broadcast %62 : vector<1x512xf32> to vector<8x512xf32>
    %66 = arith.mulf %43, %65 : vector<8x512xf32>
    %67 = vector.broadcast %64 : vector<1x512xf32> to vector<8x512xf32>
    %68 = arith.addf %66, %67 : vector<8x512xf32>
    %c640 = arith.constant 640 : index
    %c0_26 = arith.constant 0 : index
    %69 = vector.load %arg1[%c640, %c0_26] : memref<2048x512xbf16, #tpu.memory_space<vmem>>, vector<512x384xbf16>
    %c2 = arith.constant 2 : index
    %c0_27 = arith.constant 0 : index
    %70 = vector.load %arg2[%c2, %c0_27] : memref<24x512xf32, #tpu.memory_space<vmem>>, vector<1x384xf32>
    %71 = arith.truncf %68 : vector<8x512xf32> to vector<8x512xbf16>
    %cst_28 = arith.constant dense<0.000000e+00> : vector<8x384xf32>
    %72 = tpu.matmul %71, %69, %cst_28 {dimension_numbers = #tpu.dot_dimension_numbers<[1], [0], [0], [1], [0, 0, 1, 1], [], []>} : vector<8x512xbf16>, vector<512x384xbf16>, vector<8x384xf32> -> vector<8x384xf32>
    %73 = vector.broadcast %70 : vector<1x384xf32> to vector<8x384xf32>
    %74 = arith.addf %72, %73 : vector<8x384xf32>
    %cst_29 = arith.constant 0.00999999977 : f32
    %75 = vector.broadcast %cst_29 : f32 to vector<8x384xf32>
    %76 = arith.mulf %75, %74 : vector<8x384xf32>
    %77 = arith.maximumf %74, %76 : vector<8x384xf32>
    %c10 = arith.constant 10 : index
    %c0_30 = arith.constant 0 : index
    %78 = vector.load %arg2[%c10, %c0_30] : memref<24x512xf32, #tpu.memory_space<vmem>>, vector<1x384xf32>
    %c18 = arith.constant 18 : index
    %c0_31 = arith.constant 0 : index
    %79 = vector.load %arg2[%c18, %c0_31] : memref<24x512xf32, #tpu.memory_space<vmem>>, vector<1x384xf32>
    %cst_32 = arith.constant dense<0.000000e+00> : vector<384xf32>
    %80 = vector.multi_reduction <add>, %77, %cst_32 [0] : vector<8x384xf32> to vector<384xf32>
    %81 = vector.shape_cast %80 : vector<384xf32> to vector<1x384xf32>
    %cst_33 = arith.constant 1.250000e-01 : f32
    %82 = vector.broadcast %cst_33 : f32 to vector<1x384xf32>
    %83 = arith.mulf %81, %82 : vector<1x384xf32>
    %84 = arith.mulf %77, %77 : vector<8x384xf32>
    %cst_34 = arith.constant dense<0.000000e+00> : vector<384xf32>
    %85 = vector.multi_reduction <add>, %84, %cst_34 [0] : vector<8x384xf32> to vector<384xf32>
    %86 = vector.shape_cast %85 : vector<384xf32> to vector<1x384xf32>
    %cst_35 = arith.constant 1.250000e-01 : f32
    %87 = vector.broadcast %cst_35 : f32 to vector<1x384xf32>
    %88 = arith.mulf %86, %87 : vector<1x384xf32>
    %89 = arith.mulf %83, %83 : vector<1x384xf32>
    %90 = arith.subf %88, %89 : vector<1x384xf32>
    %cst_36 = arith.constant 0.000000e+00 : f32
    %91 = vector.broadcast %cst_36 : f32 to vector<1x384xf32>
    %92 = arith.maximumf %90, %91 : vector<1x384xf32>
    %cst_37 = arith.constant 9.99999974E-6 : f32
    %93 = vector.broadcast %cst_37 : f32 to vector<1x384xf32>
    %94 = arith.addf %92, %93 : vector<1x384xf32>
    %95 = math.rsqrt %94 : vector<1x384xf32>
    %96 = arith.mulf %78, %95 : vector<1x384xf32>
    %97 = arith.mulf %83, %96 : vector<1x384xf32>
    %98 = arith.subf %79, %97 : vector<1x384xf32>
    %99 = vector.broadcast %96 : vector<1x384xf32> to vector<8x384xf32>
    %100 = arith.mulf %77, %99 : vector<8x384xf32>
    %101 = vector.broadcast %98 : vector<1x384xf32> to vector<8x384xf32>
    %102 = arith.addf %100, %101 : vector<8x384xf32>
    %c1152 = arith.constant 1152 : index
    %c0_38 = arith.constant 0 : index
    %103 = vector.load %arg1[%c1152, %c0_38] : memref<2048x512xbf16, #tpu.memory_space<vmem>>, vector<384x256xbf16>
    %c3 = arith.constant 3 : index
    %c0_39 = arith.constant 0 : index
    %104 = vector.load %arg2[%c3, %c0_39] : memref<24x512xf32, #tpu.memory_space<vmem>>, vector<1x256xf32>
    %105 = arith.truncf %102 : vector<8x384xf32> to vector<8x384xbf16>
    %cst_40 = arith.constant dense<0.000000e+00> : vector<8x256xf32>
    %106 = tpu.matmul %105, %103, %cst_40 {dimension_numbers = #tpu.dot_dimension_numbers<[1], [0], [0], [1], [0, 0, 1, 1], [], []>} : vector<8x384xbf16>, vector<384x256xbf16>, vector<8x256xf32> -> vector<8x256xf32>
    %107 = vector.broadcast %104 : vector<1x256xf32> to vector<8x256xf32>
    %108 = arith.addf %106, %107 : vector<8x256xf32>
    %cst_41 = arith.constant 0.00999999977 : f32
    %109 = vector.broadcast %cst_41 : f32 to vector<8x256xf32>
    %110 = arith.mulf %109, %108 : vector<8x256xf32>
    %111 = arith.maximumf %108, %110 : vector<8x256xf32>
    %c11 = arith.constant 11 : index
    %c0_42 = arith.constant 0 : index
    %112 = vector.load %arg2[%c11, %c0_42] : memref<24x512xf32, #tpu.memory_space<vmem>>, vector<1x256xf32>
    %c19 = arith.constant 19 : index
    %c0_43 = arith.constant 0 : index
    %113 = vector.load %arg2[%c19, %c0_43] : memref<24x512xf32, #tpu.memory_space<vmem>>, vector<1x256xf32>
    %cst_44 = arith.constant dense<0.000000e+00> : vector<256xf32>
    %114 = vector.multi_reduction <add>, %111, %cst_44 [0] : vector<8x256xf32> to vector<256xf32>
    %115 = vector.shape_cast %114 : vector<256xf32> to vector<1x256xf32>
    %cst_45 = arith.constant 1.250000e-01 : f32
    %116 = vector.broadcast %cst_45 : f32 to vector<1x256xf32>
    %117 = arith.mulf %115, %116 : vector<1x256xf32>
    %118 = arith.mulf %111, %111 : vector<8x256xf32>
    %cst_46 = arith.constant dense<0.000000e+00> : vector<256xf32>
    %119 = vector.multi_reduction <add>, %118, %cst_46 [0] : vector<8x256xf32> to vector<256xf32>
    %120 = vector.shape_cast %119 : vector<256xf32> to vector<1x256xf32>
    %cst_47 = arith.constant 1.250000e-01 : f32
    %121 = vector.broadcast %cst_47 : f32 to vector<1x256xf32>
    %122 = arith.mulf %120, %121 : vector<1x256xf32>
    %123 = arith.mulf %117, %117 : vector<1x256xf32>
    %124 = arith.subf %122, %123 : vector<1x256xf32>
    %cst_48 = arith.constant 0.000000e+00 : f32
    %125 = vector.broadcast %cst_48 : f32 to vector<1x256xf32>
    %126 = arith.maximumf %124, %125 : vector<1x256xf32>
    %cst_49 = arith.constant 9.99999974E-6 : f32
    %127 = vector.broadcast %cst_49 : f32 to vector<1x256xf32>
    %128 = arith.addf %126, %127 : vector<1x256xf32>
    %129 = math.rsqrt %128 : vector<1x256xf32>
    %130 = arith.mulf %112, %129 : vector<1x256xf32>
    %131 = arith.mulf %117, %130 : vector<1x256xf32>
    %132 = arith.subf %113, %131 : vector<1x256xf32>
    %133 = vector.broadcast %130 : vector<1x256xf32> to vector<8x256xf32>
    %134 = arith.mulf %111, %133 : vector<8x256xf32>
    %135 = vector.broadcast %132 : vector<1x256xf32> to vector<8x256xf32>
    %136 = arith.addf %134, %135 : vector<8x256xf32>
    %c1536 = arith.constant 1536 : index
    %c0_50 = arith.constant 0 : index
    %137 = vector.load %arg1[%c1536, %c0_50] : memref<2048x512xbf16, #tpu.memory_space<vmem>>, vector<256x128xbf16>
    %c4 = arith.constant 4 : index
    %c0_51 = arith.constant 0 : index
    %138 = vector.load %arg2[%c4, %c0_51] : memref<24x512xf32, #tpu.memory_space<vmem>>, vector<1x128xf32>
    %139 = arith.truncf %136 : vector<8x256xf32> to vector<8x256xbf16>
    %cst_52 = arith.constant dense<0.000000e+00> : vector<8x128xf32>
    %140 = tpu.matmul %139, %137, %cst_52 {dimension_numbers = #tpu.dot_dimension_numbers<[1], [0], [0], [1], [0, 0, 1, 1], [], []>} : vector<8x256xbf16>, vector<256x128xbf16>, vector<8x128xf32> -> vector<8x128xf32>
    %141 = vector.broadcast %138 : vector<1x128xf32> to vector<8x128xf32>
    %142 = arith.addf %140, %141 : vector<8x128xf32>
    %cst_53 = arith.constant 0.00999999977 : f32
    %143 = vector.broadcast %cst_53 : f32 to vector<8x128xf32>
    %144 = arith.mulf %143, %142 : vector<8x128xf32>
    %145 = arith.maximumf %142, %144 : vector<8x128xf32>
    %c12 = arith.constant 12 : index
    %c0_54 = arith.constant 0 : index
    %146 = vector.load %arg2[%c12, %c0_54] : memref<24x512xf32, #tpu.memory_space<vmem>>, vector<1x128xf32>
    %c20 = arith.constant 20 : index
    %c0_55 = arith.constant 0 : index
    %147 = vector.load %arg2[%c20, %c0_55] : memref<24x512xf32, #tpu.memory_space<vmem>>, vector<1x128xf32>
    %cst_56 = arith.constant dense<0.000000e+00> : vector<128xf32>
    %148 = vector.multi_reduction <add>, %145, %cst_56 [0] : vector<8x128xf32> to vector<128xf32>
    %149 = vector.shape_cast %148 : vector<128xf32> to vector<1x128xf32>
    %cst_57 = arith.constant 1.250000e-01 : f32
    %150 = vector.broadcast %cst_57 : f32 to vector<1x128xf32>
    %151 = arith.mulf %149, %150 : vector<1x128xf32>
    %152 = arith.mulf %145, %145 : vector<8x128xf32>
    %cst_58 = arith.constant dense<0.000000e+00> : vector<128xf32>
    %153 = vector.multi_reduction <add>, %152, %cst_58 [0] : vector<8x128xf32> to vector<128xf32>
    %154 = vector.shape_cast %153 : vector<128xf32> to vector<1x128xf32>
    %cst_59 = arith.constant 1.250000e-01 : f32
    %155 = vector.broadcast %cst_59 : f32 to vector<1x128xf32>
    %156 = arith.mulf %154, %155 : vector<1x128xf32>
    %157 = arith.mulf %151, %151 : vector<1x128xf32>
    %158 = arith.subf %156, %157 : vector<1x128xf32>
    %cst_60 = arith.constant 0.000000e+00 : f32
    %159 = vector.broadcast %cst_60 : f32 to vector<1x128xf32>
    %160 = arith.maximumf %158, %159 : vector<1x128xf32>
    %cst_61 = arith.constant 9.99999974E-6 : f32
    %161 = vector.broadcast %cst_61 : f32 to vector<1x128xf32>
    %162 = arith.addf %160, %161 : vector<1x128xf32>
    %163 = math.rsqrt %162 : vector<1x128xf32>
    %164 = arith.mulf %146, %163 : vector<1x128xf32>
    %165 = arith.mulf %151, %164 : vector<1x128xf32>
    %166 = arith.subf %147, %165 : vector<1x128xf32>
    %167 = vector.broadcast %164 : vector<1x128xf32> to vector<8x128xf32>
    %168 = arith.mulf %145, %167 : vector<8x128xf32>
    %169 = vector.broadcast %166 : vector<1x128xf32> to vector<8x128xf32>
    %170 = arith.addf %168, %169 : vector<8x128xf32>
    %c1792 = arith.constant 1792 : index
    %c0_62 = arith.constant 0 : index
    %171 = vector.load %arg1[%c1792, %c0_62] : memref<2048x512xbf16, #tpu.memory_space<vmem>>, vector<128x128xbf16>
    %c5 = arith.constant 5 : index
    %c0_63 = arith.constant 0 : index
    %172 = vector.load %arg2[%c5, %c0_63] : memref<24x512xf32, #tpu.memory_space<vmem>>, vector<1x128xf32>
    %173 = arith.truncf %170 : vector<8x128xf32> to vector<8x128xbf16>
    %cst_64 = arith.constant dense<0.000000e+00> : vector<8x128xf32>
    %174 = tpu.matmul %173, %171, %cst_64 {dimension_numbers = #tpu.dot_dimension_numbers<[1], [0], [0], [1], [0, 0, 1, 1], [], []>} : vector<8x128xbf16>, vector<128x128xbf16>, vector<8x128xf32> -> vector<8x128xf32>
    %175 = vector.broadcast %172 : vector<1x128xf32> to vector<8x128xf32>
    %176 = arith.addf %174, %175 : vector<8x128xf32>
    %cst_65 = arith.constant 0.00999999977 : f32
    %177 = vector.broadcast %cst_65 : f32 to vector<8x128xf32>
    %178 = arith.mulf %177, %176 : vector<8x128xf32>
    %179 = arith.maximumf %176, %178 : vector<8x128xf32>
    %c13 = arith.constant 13 : index
    %c0_66 = arith.constant 0 : index
    %180 = vector.load %arg2[%c13, %c0_66] : memref<24x512xf32, #tpu.memory_space<vmem>>, vector<1x128xf32>
    %c21 = arith.constant 21 : index
    %c0_67 = arith.constant 0 : index
    %181 = vector.load %arg2[%c21, %c0_67] : memref<24x512xf32, #tpu.memory_space<vmem>>, vector<1x128xf32>
    %cst_68 = arith.constant dense<0.000000e+00> : vector<128xf32>
    %182 = vector.multi_reduction <add>, %179, %cst_68 [0] : vector<8x128xf32> to vector<128xf32>
    %183 = vector.shape_cast %182 : vector<128xf32> to vector<1x128xf32>
    %cst_69 = arith.constant 1.250000e-01 : f32
    %184 = vector.broadcast %cst_69 : f32 to vector<1x128xf32>
    %185 = arith.mulf %183, %184 : vector<1x128xf32>
    %186 = arith.mulf %179, %179 : vector<8x128xf32>
    %cst_70 = arith.constant dense<0.000000e+00> : vector<128xf32>
    %187 = vector.multi_reduction <add>, %186, %cst_70 [0] : vector<8x128xf32> to vector<128xf32>
    %188 = vector.shape_cast %187 : vector<128xf32> to vector<1x128xf32>
    %cst_71 = arith.constant 1.250000e-01 : f32
    %189 = vector.broadcast %cst_71 : f32 to vector<1x128xf32>
    %190 = arith.mulf %188, %189 : vector<1x128xf32>
    %191 = arith.mulf %185, %185 : vector<1x128xf32>
    %192 = arith.subf %190, %191 : vector<1x128xf32>
    %cst_72 = arith.constant 0.000000e+00 : f32
    %193 = vector.broadcast %cst_72 : f32 to vector<1x128xf32>
    %194 = arith.maximumf %192, %193 : vector<1x128xf32>
    %cst_73 = arith.constant 9.99999974E-6 : f32
    %195 = vector.broadcast %cst_73 : f32 to vector<1x128xf32>
    %196 = arith.addf %194, %195 : vector<1x128xf32>
    %197 = math.rsqrt %196 : vector<1x128xf32>
    %198 = arith.mulf %180, %197 : vector<1x128xf32>
    %199 = arith.mulf %185, %198 : vector<1x128xf32>
    %200 = arith.subf %181, %199 : vector<1x128xf32>
    %201 = vector.broadcast %198 : vector<1x128xf32> to vector<8x128xf32>
    %202 = arith.mulf %179, %201 : vector<8x128xf32>
    %203 = vector.broadcast %200 : vector<1x128xf32> to vector<8x128xf32>
    %204 = arith.addf %202, %203 : vector<8x128xf32>
    %c1920 = arith.constant 1920 : index
    %c0_74 = arith.constant 0 : index
    %205 = vector.load %arg1[%c1920, %c0_74] : memref<2048x512xbf16, #tpu.memory_space<vmem>>, vector<128x128xbf16>
    %c6 = arith.constant 6 : index
    %c0_75 = arith.constant 0 : index
    %206 = vector.load %arg2[%c6, %c0_75] : memref<24x512xf32, #tpu.memory_space<vmem>>, vector<1x128xf32>
    %207 = arith.truncf %204 : vector<8x128xf32> to vector<8x128xbf16>
    %cst_76 = arith.constant dense<0.000000e+00> : vector<8x128xf32>
    %208 = tpu.matmul %207, %205, %cst_76 {dimension_numbers = #tpu.dot_dimension_numbers<[1], [0], [0], [1], [0, 0, 1, 1], [], []>} : vector<8x128xbf16>, vector<128x128xbf16>, vector<8x128xf32> -> vector<8x128xf32>
    %209 = vector.broadcast %206 : vector<1x128xf32> to vector<8x128xf32>
    %210 = arith.addf %208, %209 : vector<8x128xf32>
    %cst_77 = arith.constant dense<0xFF800000> : vector<8xf32>
    %211 = vector.multi_reduction <maximumf>, %210, %cst_77 [1] : vector<8x128xf32> to vector<8xf32>
    %212 = vector.shape_cast %211 : vector<8xf32> to vector<8x1xf32>
    %213 = vector.broadcast %212 : vector<8x1xf32> to vector<8x128xf32>
    %214 = arith.subf %210, %213 : vector<8x128xf32>
    %215 = math.exp %214 : vector<8x128xf32>
    %cst_78 = arith.constant dense<0.000000e+00> : vector<8xf32>
    %216 = vector.multi_reduction <add>, %215, %cst_78 [1] : vector<8x128xf32> to vector<8xf32>
    %217 = vector.shape_cast %216 : vector<8xf32> to vector<8x1xf32>
    %218 = vector.broadcast %217 : vector<8x1xf32> to vector<8x128xf32>
    %219 = arith.divf %215, %218 : vector<8x128xf32>
    %c0_79 = arith.constant 0 : index
    %c0_80 = arith.constant 0 : index
    %220 = vector.load %arg3[%c0_79, %c0_80] : memref<8x128xf32, #tpu.memory_space<vmem>>, vector<8x128xf32>
    tpu.vector_store %arg3[%c0_79, %c0_80], %219 {strides = array<i32>} : memref<8x128xf32, #tpu.memory_space<vmem>>, vector<8x128xf32>,
    return
  }
}

</mosaic_0001>

<bundles_post_ra>
// kernel: image_classifier_forward.1
= control target key start
LH: loop header
LB: loop body
LE: loop exit
PB: predicated region body
PF: predicated region fallthrough
CT: control target
= control target key end

     0   :  { %8 = vsyncpa [#allocation3], 0  ;;  %s4998_s0 = inlined_call_operand.vmem [shape: f32[8,128], index: 0, kind: input, shape index: {}]   ;;  %s4999_s1 = inlined_call_operand.hbm [shape: bf16[2048,512], index: 1, kind: input, shape index: {}]   ;;  %s5000_s2 = inlined_call_operand.hbm [shape: f32[24,512], index: 2, kind: input, shape index: {}]   ;;  %s5001_s3 = inlined_call_operand.hbm [shape: f32[8,128], index: 3, kind: output, shape index: {}]  }
   0x1   :  { %9 = vsyncpa [#allocation6], 0 }
   0x2   :  { %10 = vsyncpa [#allocation4], 0  ;;  %s4744_s12 = smov [#allocation2]   ;;  %s4672_s16 = scalar_lea.hbm %s4999_s1, 65536 }
   0x3   :  { %s18_s13 = sshll.u32 %s4744_s12, 4  ;;  %p4673_p0 = scmp.ne.s32.totalorder %s4999_s1, %s4672_s16  ;;  %s19_s13 = int_to_ptr.vmem [resolvable:$true] %s18_s13 }
   0x4   :  { %p4676_p1 = scmp.lt.u32.totalorder %s4672_s16, %s4999_s1 }
   0x6   :  { %p4678_p2 = pnand %p4676_p1, %p4673_p0 }
   0x8   :  { %4681 = shalt.err (!%p4678_p2)
}
   0x9   :  { %s4682_s21 = scalar_lea.vmem %s19_s13, 65536  ;;  %p4687_p4 = scmp.lt.s32.totalorder %s19_s13, %s19_s13 }
   0xa   :  { %p4683_p3 = scmp.ne.s32.totalorder %s19_s13, %s4682_s21  ;;  %p4688_p5 = scmp.lt.s32.totalorder %s4682_s21, %s4682_s21 }
   0xc   :  { %p4689_p6 = por %p4688_p5, %p4687_p4 }
   0xe   :  { %p4690_p7 = pnand %p4689_p6, %p4683_p3 }
  0x10   :  { %4693 = shalt.err (!%p4690_p7)
}
  0x11   :  { %s4745_s22 = smov 256   ;;  %s4746_s23 = smov 16  }
  0x12   :  { %24 = dma.hbm_to_vmem [thread:$0]  %s4999_s1, 65536, %s19_s13, [#allocation3], %s4745_s22, %s4745_s22, %s4746_s23  }
  0x13   :  { %s4747_s26 = smov [#allocation5]   ;;  %s4694_s30 = scalar_lea.hbm %s5000_s2, 1536 }
  0x14   :  { %s30_s27 = sshll.u32 %s4747_s26, 4  ;;  %p4695_p8 = scmp.ne.s32.totalorder %s5000_s2, %s4694_s30  ;;  %s31_s27 = int_to_ptr.vmem [resolvable:$true] %s30_s27 }
  0x15   :  { %p4698_p9 = scmp.lt.u32.totalorder %s4694_s30, %s5000_s2 }
  0x17   :  { %p4700_p10 = pnand %p4698_p9, %p4695_p8 }
  0x19   :  { %4703 = shalt.err (!%p4700_p10)
}
  0x1a   :  { %s4704_s8 = scalar_lea.vmem %s31_s27, 1536  ;;  %p4709_p12 = scmp.lt.s32.totalorder %s31_s27, %s31_s27 }
  0x1b   :  { %p4705_p11 = scmp.ne.s32.totalorder %s31_s27, %s4704_s8  ;;  %p4710_p13 = scmp.lt.s32.totalorder %s4704_s8, %s4704_s8 }
  0x1d   :  { %p4711_p0 = por %p4710_p13, %p4709_p12 }
  0x1f   :  { %p4712_p1 = pnand %p4711_p0, %p4705_p11 }
  0x21   :  { %4715 = shalt.err (!%p4712_p1)
}
  0x22   :  { %s4748_s1 = smov 512   ;;  %s4749_s9 = smov 32  }
  0x23   :  { %36 = dma.hbm_to_vmem [thread:$0]  %s5000_s2, 1536, %s31_s27, [#allocation6], %s4748_s1, %s4748_s1, %s4749_s9  }
  0x24   :  { %4738 = dma.done.wait [#allocation3], 65536  }
  0x25   :  { %4739 = vsyncadd [#allocation3], 4294901760 }
  0x26   :  { %4740 = dma.done.wait [#allocation6], 1536  }
  0x27   :  { %4741 = vsyncadd [#allocation6], 4294965760  ;;  %v4750_v0 = vmov 0   ;;  %v4166_v1 = vld [vmem:[#allocation2 + $0x4] ss:$16 sps:$4 sm:$0xff]   ;;  %vm4753_vm0 = vmmov 0  }
  0x28   :  { %292 = vmatprep.mubr.bf16.mxu0 %v4750_v0  ;;  %333 = vmatprep.mubr.bf16.mxu1 %v4750_v0  ;;  %v4168_v2 = vld [vmem:[#allocation2 + $0xc] ss:$16 sps:$4 sm:$0xff]   ;;  %v4170_v3 = vld [vmem:[#allocation2] ss:$16 sps:$4 sm:$0xff]   ;;  %v4171_v4 = vld [vmem:[#allocation2 + $0x8] ss:$16 sps:$4 sm:$0xff]  }
  0x29   :  { %260 = vmatprep.subr.bf16.mxu0 %v4166_v1  ;;  %301 = vmatprep.subr.bf16.mxu1 %v4168_v2  ;;  %v4172_v5 = vld [vmem:[#allocation2 + $0x24] ss:$16 sps:$4 sm:$0xff]   ;;  %v4174_v6 = vld [vmem:[#allocation2 + $0x2c] ss:$16 sps:$4 sm:$0xff]   ;;  %v4176_v7 = vld [vmem:[#allocation2 + $0x20] ss:$16 sps:$4 sm:$0xff]  }
  0x2a   :  { %261 = vmatpush1.bf16.msra.mxu0 %v4170_v3  ;;  %302 = vmatpush1.bf16.msra.mxu1 %v4171_v4  ;;  %v4177_v8 = vld [vmem:[#allocation2 + $0x28] ss:$16 sps:$4 sm:$0xff]   ;;  %v4178_v9 = vld [vmem:[#allocation2 + $0x44] ss:$16 sps:$4 sm:$0xff]   ;;  %v4180_v10 = vld [vmem:[#allocation2 + $0x4c] ss:$16 sps:$4 sm:$0xff]  }
  0x2b   :  { %262 = vmatprep.subr.bf16.mxu0 %v4172_v5  ;;  %303 = vmatprep.subr.bf16.mxu1 %v4174_v6  ;;  %v4182_v11 = vld [vmem:[#allocation2 + $0x40] ss:$16 sps:$4 sm:$0xff]   ;;  %v4183_v12 = vld [vmem:[#allocation2 + $0x48] ss:$16 sps:$4 sm:$0xff]   ;;  %v4184_v13 = vld [vmem:[#allocation2 + $0x64] ss:$16 sps:$4 sm:$0xff]  }
  0x2c   :  { %v4186_v14 = vld [vmem:[#allocation2 + $0x6c] ss:$16 sps:$4 sm:$0xff]   ;;  %v4188_v15 = vld [vmem:[#allocation2 + $0x60] ss:$16 sps:$4 sm:$0xff]   ;;  %v4189_v16 = vld [vmem:[#allocation2 + $0x68] ss:$16 sps:$4 sm:$0xff]  }
  0x2d   :  { %v4190_v17 = vld [vmem:[#allocation2 + $0x84] ss:$16 sps:$4 sm:$0xff]   ;;  %v4192_v18 = vld [vmem:[#allocation2 + $0x8c] ss:$16 sps:$4 sm:$0xff]   ;;  %v4194_v19 = vld [vmem:[#allocation2 + $0x80] ss:$16 sps:$4 sm:$0xff]  }
  0x2e   :  { %263 = vmatpush1.bf16.msra.mxu0 %v4176_v7  ;;  %304 = vmatpush1.bf16.msra.mxu1 %v4177_v8  ;;  %v4195_v20 = vld [vmem:[#allocation2 + $0x88] ss:$16 sps:$4 sm:$0xff]   ;;  %v4196_v21 = vld [vmem:[#allocation2 + $0xa4] ss:$16 sps:$4 sm:$0xff]   ;;  %v4198_v22 = vld [vmem:[#allocation2 + $0xac] ss:$16 sps:$4 sm:$0xff]  }
  0x2f   :  { %264 = vmatprep.subr.bf16.mxu0 %v4178_v9  ;;  %305 = vmatprep.subr.bf16.mxu1 %v4180_v10  ;;  %v4200_v23 = vld [vmem:[#allocation2 + $0xa0] ss:$16 sps:$4 sm:$0xff]   ;;  %v4201_v24 = vld [vmem:[#allocation2 + $0xa8] ss:$16 sps:$4 sm:$0xff]   ;;  %v4202_v25 = vld [vmem:[#allocation2 + $0xc4] ss:$16 sps:$4 sm:$0xff]  }
  0x30   :  { %v4204_v26 = vld [vmem:[#allocation2 + $0xcc] ss:$16 sps:$4 sm:$0xff]   ;;  %v4206_v27 = vld [vmem:[#allocation2 + $0xc0] ss:$16 sps:$4 sm:$0xff]   ;;  %v4207_v28 = vld [vmem:[#allocation2 + $0xc8] ss:$16 sps:$4 sm:$0xff]  }
  0x31   :  { %v4208_v29 = vld [vmem:[#allocation2 + $0xe4] ss:$16 sps:$4 sm:$0xff]   ;;  %v4210_v30 = vld [vmem:[#allocation2 + $0xec] ss:$16 sps:$4 sm:$0xff]   ;;  %v4212_v31 = vld [vmem:[#allocation2 + $0xe0] ss:$16 sps:$4 sm:$0xff]  }
  0x32   :  { %265 = vmatpush1.bf16.msra.mxu0 %v4182_v11  ;;  %306 = vmatpush1.bf16.msra.mxu1 %v4183_v12  ;;  %v4213_v32 = vld [vmem:[#allocation2 + $0xe8] ss:$16 sps:$4 sm:$0xff]   ;;  %v44_v33 = vld [vmem:[%s4998_s0] sm:$0xff]  ;;  %v4219_v36 = vld [vmem:[#allocation2 + $0x10c] ss:$16 sps:$4 sm:$0xff]   ;;  %s4754_s0 = smov [#allocation7]  }
  0x33   :  { %266 = vmatprep.subr.bf16.mxu0 %v4184_v13  ;;  %307 = vmatprep.subr.bf16.mxu1 %v4186_v14  ;;  %v78_v34 = vpack.c.bf16 %v44_v33, %v44_v33  ;;  %v4216_v35 = vld [vmem:[#allocation2 + $0x104] ss:$16 sps:$4 sm:$0xff]   ;;  %v4214_v37 = vld [vmem:[#allocation2 + $0x100] ss:$16 sps:$4 sm:$0xff]   ;;  %v4217_v38 = vld [vmem:[#allocation2 + $0x108] ss:$16 sps:$4 sm:$0xff]  }
  0x34   :  { %v4222_v39 = vld [vmem:[#allocation2 + $0x124] ss:$16 sps:$4 sm:$0xff]   ;;  %v4225_v40 = vld [vmem:[#allocation2 + $0x12c] ss:$16 sps:$4 sm:$0xff]   ;;  %v4220_v41 = vld [vmem:[#allocation2 + $0x120] ss:$16 sps:$4 sm:$0xff]  }
  0x35   :  { %v4223_v42 = vld [vmem:[#allocation2 + $0x128] ss:$16 sps:$4 sm:$0xff]   ;;  %v4228_v43 = vld [vmem:[#allocation2 + $0x144] ss:$16 sps:$4 sm:$0xff]   ;;  %v4231_v44 = vld [vmem:[#allocation2 + $0x14c] ss:$16 sps:$4 sm:$0xff]  }
  0x36   :  { %267 = vmatpush1.bf16.msra.mxu0 %v4188_v15  ;;  %308 = vmatpush1.bf16.msra.mxu1 %v4189_v16  ;;  %v4226_v45 = vld [vmem:[#allocation2 + $0x140] ss:$16 sps:$4 sm:$0xff]   ;;  %v4229_v46 = vld [vmem:[#allocation2 + $0x148] ss:$16 sps:$4 sm:$0xff]   ;;  %v4234_v47 = vld [vmem:[#allocation2 + $0x164] ss:$16 sps:$4 sm:$0xff]  }
  0x37   :  { %268 = vmatprep.subr.bf16.mxu0 %v4190_v17  ;;  %309 = vmatprep.subr.bf16.mxu1 %v4192_v18  ;;  %v4237_v48 = vld [vmem:[#allocation2 + $0x16c] ss:$16 sps:$4 sm:$0xff]   ;;  %v4232_v49 = vld [vmem:[#allocation2 + $0x160] ss:$16 sps:$4 sm:$0xff]   ;;  %v4235_v50 = vld [vmem:[#allocation2 + $0x168] ss:$16 sps:$4 sm:$0xff]  }
  0x38   :  { %v4240_v51 = vld [vmem:[#allocation2 + $0x184] ss:$16 sps:$4 sm:$0xff]   ;;  %v4243_v52 = vld [vmem:[#allocation2 + $0x18c] ss:$16 sps:$4 sm:$0xff]   ;;  %v4238_v53 = vld [vmem:[#allocation2 + $0x180] ss:$16 sps:$4 sm:$0xff]  }
  0x39   :  { %v4241_v54 = vld [vmem:[#allocation2 + $0x188] ss:$16 sps:$4 sm:$0xff]   ;;  %v4246_v55 = vld [vmem:[#allocation2 + $0x1a4] ss:$16 sps:$4 sm:$0xff]   ;;  %v4249_v56 = vld [vmem:[#allocation2 + $0x1ac] ss:$16 sps:$4 sm:$0xff]  }
  0x3a   :  { %269 = vmatpush1.bf16.msra.mxu0 %v4194_v19  ;;  %310 = vmatpush1.bf16.msra.mxu1 %v4195_v20  ;;  %v4244_v57 = vld [vmem:[#allocation2 + $0x1a0] ss:$16 sps:$4 sm:$0xff]   ;;  %v4247_v58 = vld [vmem:[#allocation2 + $0x1a8] ss:$16 sps:$4 sm:$0xff]   ;;  %v4252_v59 = vld [vmem:[#allocation2 + $0x1c4] ss:$16 sps:$4 sm:$0xff]  }
  0x3b   :  { %270 = vmatprep.subr.bf16.mxu0 %v4196_v21  ;;  %311 = vmatprep.subr.bf16.mxu1 %v4198_v22  ;;  %v4255_v60 = vld [vmem:[#allocation2 + $0x1cc] ss:$16 sps:$4 sm:$0xff]   ;;  %v4250_v61 = vld [vmem:[#allocation2 + $0x1c0] ss:$16 sps:$4 sm:$0xff]   ;;  %v4253_v62 = vld [vmem:[#allocation2 + $0x1c8] ss:$16 sps:$4 sm:$0xff]  }
  0x3c   :  { %v4258_v63 = vld [vmem:[#allocation2 + $0x1e4] ss:$16 sps:$4 sm:$0xff]   ;;  %v4261_v1 = vld [vmem:[#allocation2 + $0x1ec] ss:$16 sps:$4 sm:$0xff]   ;;  %v4256_v2 = vld [vmem:[#allocation2 + $0x1e0] ss:$16 sps:$4 sm:$0xff]  }
  0x3d   :  { %v4259_v3 = vld [vmem:[#allocation2 + $0x1e8] ss:$16 sps:$4 sm:$0xff]   ;;  %v4264_v4 = vld [vmem:[#allocation2 + $0x204] ss:$16 sps:$4 sm:$0xff]   ;;  %v4267_v5 = vld [vmem:[#allocation2 + $0x20c] ss:$16 sps:$4 sm:$0xff]  }
  0x3e   :  { %271 = vmatpush1.bf16.msra.mxu0 %v4200_v23  ;;  %312 = vmatpush1.bf16.msra.mxu1 %v4201_v24  ;;  %v4262_v6 = vld [vmem:[#allocation2 + $0x200] ss:$16 sps:$4 sm:$0xff]   ;;  %v4265_v7 = vld [vmem:[#allocation2 + $0x208] ss:$16 sps:$4 sm:$0xff]   ;;  %v4270_v8 = vld [vmem:[#allocation2 + $0x224] ss:$16 sps:$4 sm:$0xff]  }
  0x3f   :  { %272 = vmatprep.subr.bf16.mxu0 %v4202_v25  ;;  %313 = vmatprep.subr.bf16.mxu1 %v4204_v26  ;;  %v4273_v9 = vld [vmem:[#allocation2 + $0x22c] ss:$16 sps:$4 sm:$0xff]   ;;  %v4268_v10 = vld [vmem:[#allocation2 + $0x220] ss:$16 sps:$4 sm:$0xff]   ;;  %v4271_v11 = vld [vmem:[#allocation2 + $0x228] ss:$16 sps:$4 sm:$0xff]  }
  0x40   :  { %v4276_v12 = vld [vmem:[#allocation2 + $0x244] ss:$16 sps:$4 sm:$0xff]   ;;  %v4279_v13 = vld [vmem:[#allocation2 + $0x24c] ss:$16 sps:$4 sm:$0xff]   ;;  %v4274_v14 = vld [vmem:[#allocation2 + $0x240] ss:$16 sps:$4 sm:$0xff]  }
  0x41   :  { %v4277_v15 = vld [vmem:[#allocation2 + $0x248] ss:$16 sps:$4 sm:$0xff]   ;;  %v4282_v16 = vld [vmem:[#allocation2 + $0x264] ss:$16 sps:$4 sm:$0xff]   ;;  %v4285_v17 = vld [vmem:[#allocation2 + $0x26c] ss:$16 sps:$4 sm:$0xff]  }
  0x42   :  { %273 = vmatpush1.bf16.msra.mxu0 %v4206_v27  ;;  %314 = vmatpush1.bf16.msra.mxu1 %v4207_v28  ;;  %v4280_v18 = vld [vmem:[#allocation2 + $0x260] ss:$16 sps:$4 sm:$0xff]   ;;  %v4283_v19 = vld [vmem:[#allocation2 + $0x268] ss:$16 sps:$4 sm:$0xff]   ;;  %v4288_v20 = vld [vmem:[#allocation2 + $0x284] ss:$16 sps:$4 sm:$0xff]  }
  0x43   :  { %274 = vmatprep.subr.bf16.mxu0 %v4208_v29  ;;  %315 = vmatprep.subr.bf16.mxu1 %v4210_v30  ;;  %v4291_v21 = vld [vmem:[#allocation2 + $0x28c] ss:$16 sps:$4 sm:$0xff]   ;;  %v4286_v22 = vld [vmem:[#allocation2 + $0x280] ss:$16 sps:$4 sm:$0xff]   ;;  %v4289_v23 = vld [vmem:[#allocation2 + $0x288] ss:$16 sps:$4 sm:$0xff]  }
  0x44   :  { %v4294_v24 = vld [vmem:[#allocation2 + $0x2a4] ss:$16 sps:$4 sm:$0xff]   ;;  %v4297_v25 = vld [vmem:[#allocation2 + $0x2ac] ss:$16 sps:$4 sm:$0xff]   ;;  %v4292_v26 = vld [vmem:[#allocation2 + $0x2a0] ss:$16 sps:$4 sm:$0xff]  }
  0x45   :  { %v4295_v27 = vld [vmem:[#allocation2 + $0x2a8] ss:$16 sps:$4 sm:$0xff]   ;;  %v4300_v28 = vld [vmem:[#allocation2 + $0x2c4] ss:$16 sps:$4 sm:$0xff]   ;;  %v4303_v29 = vld [vmem:[#allocation2 + $0x2cc] ss:$16 sps:$4 sm:$0xff]  }
  0x46   :  { %275 = vmatpush1.bf16.msra.mxu0 %v4212_v31  ;;  %316 = vmatpush1.bf16.msra.mxu1 %v4213_v32  ;;  %v4298_v30 = vld [vmem:[#allocation2 + $0x2c0] ss:$16 sps:$4 sm:$0xff]   ;;  %v4301_v31 = vld [vmem:[#allocation2 + $0x2c8] ss:$16 sps:$4 sm:$0xff]   ;;  %v4306_v32 = vld [vmem:[#allocation2 + $0x2e4] ss:$16 sps:$4 sm:$0xff]  }
  0x47   :  { %1343 = vmatprep.subr.bf16.mxu0 %v4216_v35  ;;  %1425 = vmatprep.subr.bf16.mxu1 %v4219_v36  ;;  %v4309_v33 = vld [vmem:[#allocation2 + $0x2ec] ss:$16 sps:$4 sm:$0xff]   ;;  %v4307_v35 = vld [vmem:[#allocation2 + $0x2e8] ss:$16 sps:$4 sm:$0xff]   ;;  %v4312_v36 = vld [vmem:[#allocation2 + $0x304] ss:$16 sps:$4 sm:$0xff]  }
  0x48   :  { %s3661_s13 = sshll.u32 %s4754_s0, 4  ;;  %s3662_s13 = int_to_ptr.vmem [resolvable:$true] %s3661_s13 }
  0x49   :  { %293 = vmatmul.mubr.bf16.vlgmr.msra.gmra.mrb[0].mxu0 %v78_v34  ;;  %334 = vmatmul.mubr.bf16.vlgmr.msra.gmra.mrb[0].mxu1 %v78_v34  ;;  %v4304_v34 = vld [vmem:[#allocation2 + $0x2e0] ss:$16 sps:$4 sm:$0xff]   ;;  %s4716_s14 = scalar_lea.vmem %s3662_s13, 128  ;;  %p4721_p3 = scmp.lt.s32.totalorder %s3662_s13, %s3662_s13 }
  0x4a   :  { %1344 = vmatpush1.bf16.msra.mxu0 %v4214_v37  ;;  %1426 = vmatpush1.bf16.msra.mxu1 %v4217_v38  ;;  %v4315_v37 = vld [vmem:[#allocation2 + $0x30c] ss:$16 sps:$4 sm:$0xff]   ;;  %v80_v38 = vlaneseq  ;;  %p4717_p2 = scmp.ne.s32.totalorder %s3662_s13, %s4716_s14  ;;  %p4722_p4 = scmp.lt.s32.totalorder %s4716_s14, %s4716_s14 }
  0x4b   :  { %1345 = vmatprep.subr.bf16.mxu0 %v4222_v39  ;;  %1427 = vmatprep.subr.bf16.mxu1 %v4225_v40 }
  0x4c   :  { %v4804_v39 = vshrl.u32 %v80_v38, 7  ;;  %p4723_p5 = por %p4722_p4, %p4721_p3 }
  0x4e   :  { %1346 = vmatpush1.bf16.msra.mxu0 %v4220_v41  ;;  %1428 = vmatpush1.bf16.msra.mxu1 %v4223_v42  ;;  %v4807_v40 = vsub.s32 0, %v4804_v39  ;;  %v4810_v41 = vsub.s32 2, %v4804_v39  ;;  %v77_v42 = vld [vmem:[#allocation5] ss:$8 sm:$0xf]  ;;  %p4724_p6 = pnand %p4723_p5, %p4717_p2 }
  0x4f   :  { %1347 = vmatprep.subr.bf16.mxu0 %v4228_v43  ;;  %1429 = vmatprep.subr.bf16.mxu1 %v4231_v44  ;;  %v4813_v43 = vsub.s32 1, %v4804_v39  ;;  %v4816_v44 = vsub.s32 3, %v4804_v39 }
  0x52   :  { %1348 = vmatpush1.bf16.msra.mxu0 %v4226_v45  ;;  %1430 = vmatpush1.bf16.msra.mxu1 %v4229_v46  ;;  %v83_v45 = vrot.slane %v77_v42, %v4807_v40  ;;  %v91_v46 = vrot.slane %v77_v42, %v4810_v41 }
  0x53   :  { %1349 = vmatprep.subr.bf16.mxu0 %v4234_v47  ;;  %1431 = vmatprep.subr.bf16.mxu1 %v4237_v48  ;;  %v87_v47 = vrot.slane %v77_v42, %v4813_v43  ;;  %v95_v48 = vrot.slane %v77_v42, %v4816_v44 }
  0x56   :  { %1350 = vmatpush1.bf16.msra.mxu0 %v4232_v49  ;;  %1432 = vmatpush1.bf16.msra.mxu1 %v4235_v50 }
  0x57   :  { %1351 = vmatprep.subr.bf16.mxu0 %v4240_v51  ;;  %1433 = vmatprep.subr.bf16.mxu1 %v4243_v52 }
  0x5a   :  { %1352 = vmatpush1.bf16.msra.mxu0 %v4238_v53  ;;  %1434 = vmatpush1.bf16.msra.mxu1 %v4241_v54 }
  0x5b   :  { %1353 = vmatprep.subr.bf16.mxu0 %v4246_v55  ;;  %1435 = vmatprep.subr.bf16.mxu1 %v4249_v56 }
  0x5e   :  { %1354 = vmatpush1.bf16.msra.mxu0 %v4244_v57  ;;  %1436 = vmatpush1.bf16.msra.mxu1 %v4247_v58 }
  0x5f   :  { %1355 = vmatprep.subr.bf16.mxu0 %v4252_v59  ;;  %1437 = vmatprep.subr.bf16.mxu1 %v4255_v60 }
  0x62   :  { %1356 = vmatpush1.bf16.msra.mxu0 %v4250_v61  ;;  %1438 = vmatpush1.bf16.msra.mxu1 %v4253_v62 }
  0x63   :  { %1357 = vmatprep.subr.bf16.mxu0 %v4258_v63  ;;  %1439 = vmatprep.subr.bf16.mxu1 %v4261_v1 }
  0x66   :  { %1358 = vmatpush1.bf16.msra.mxu0 %v4256_v2  ;;  %1440 = vmatpush1.bf16.msra.mxu1 %v4259_v3 }
  0x67   :  { %1359 = vmatprep.subr.bf16.mxu0 %v4264_v4  ;;  %1441 = vmatprep.subr.bf16.mxu1 %v4267_v5 }
  0x6a   :  { %1360 = vmatpush1.bf16.msra.mxu0 %v4262_v6  ;;  %1442 = vmatpush1.bf16.msra.mxu1 %v4265_v7 }
  0x6b   :  { %1361 = vmatprep.subr.bf16.mxu0 %v4270_v8  ;;  %1443 = vmatprep.subr.bf16.mxu1 %v4273_v9 }
  0x6e   :  { %1362 = vmatpush1.bf16.msra.mxu0 %v4268_v10  ;;  %1444 = vmatpush1.bf16.msra.mxu1 %v4271_v11 }
  0x6f   :  { %1363 = vmatprep.subr.bf16.mxu0 %v4276_v12  ;;  %1445 = vmatprep.subr.bf16.mxu1 %v4279_v13 }
  0x72   :  { %1364 = vmatpush1.bf16.msra.mxu0 %v4274_v14  ;;  %1446 = vmatpush1.bf16.msra.mxu1 %v4277_v15 }
  0x73   :  { %1365 = vmatprep.subr.bf16.mxu0 %v4282_v16  ;;  %1447 = vmatprep.subr.bf16.mxu1 %v4285_v17 }
  0x76   :  { %1366 = vmatpush1.bf16.msra.mxu0 %v4280_v18  ;;  %1448 = vmatpush1.bf16.msra.mxu1 %v4283_v19 }
  0x77   :  { %1367 = vmatprep.subr.bf16.mxu0 %v4288_v20  ;;  %1449 = vmatprep.subr.bf16.mxu1 %v4291_v21 }
  0x7a   :  { %1368 = vmatpush1.bf16.msra.mxu0 %v4286_v22  ;;  %1450 = vmatpush1.bf16.msra.mxu1 %v4289_v23 }
  0x7b   :  { %1369 = vmatprep.subr.bf16.mxu0 %v4294_v24  ;;  %1451 = vmatprep.subr.bf16.mxu1 %v4297_v25 }
  0x7e   :  { %1370 = vmatpush1.bf16.msra.mxu0 %v4292_v26  ;;  %1452 = vmatpush1.bf16.msra.mxu1 %v4295_v27 }
  0x7f   :  { %1371 = vmatprep.subr.bf16.mxu0 %v4300_v28  ;;  %1453 = vmatprep.subr.bf16.mxu1 %v4303_v29 }
  0x82   :  { %1372 = vmatpush1.bf16.msra.mxu0 %v4298_v30  ;;  %1454 = vmatpush1.bf16.msra.mxu1 %v4301_v31 }
  0x83   :  { %1373 = vmatprep.subr.bf16.mxu0 %v4306_v32  ;;  %1455 = vmatprep.subr.bf16.mxu1 %v4309_v33 }
  0x86   :  { %1374 = vmatpush1.bf16.msra.mxu0 %v4304_v34  ;;  %1456 = vmatpush1.bf16.msra.mxu1 %v4307_v35 }
  0x87   :  { %1384 = vmatprep.subr.bf16.mxu0 %v4312_v36  ;;  %1466 = vmatprep.subr.bf16.mxu1 %v4315_v37 }
 0x11c   :  { %v294_v49 = vpop.f32.mrb[0].mxu0  ;;  %v335_v50 = vpop.f32.mrb[0].mxu1 }
 0x11d   :  { %v295_v51 = vadd.f32 %v294_v49, %v83_v45  ;;  %v336_v52 = vadd.f32 %v335_v50, %v91_v46  ;;  %v296_v53 = vpop.f32.mrb[1].mxu0  ;;  %v337_v54 = vpop.f32.mrb[1].mxu1 }
 0x11e   :  { %v297_v55 = vadd.f32 %v296_v53, %v87_v47  ;;  %v338_v56 = vadd.f32 %v337_v54, %v95_v48  ;;  %v298_v57 = vpop.f32.mrb[2].mxu0  ;;  %v339_v58 = vpop.f32.mrb[2].mxu1 }
 0x11f   :  { %v342_v59 = vmul.f32 0.01, %v295_v51  ;;  %v344_v60 = vmul.f32 0.01, %v336_v52  ;;  %v299_v61 = vpop.f32.mrb[3].mxu0  ;;  %v340_v62 = vpop.f32.mrb[3].mxu1 }
 0x120   :  { %v343_v63 = vmul.f32 0.01, %v297_v55  ;;  %v345_v1 = vmul.f32 0.01, %v338_v56 }
 0x121   :  { %v4822_v2 = vmax.f32 %v295_v51, %v342_v59  ;;  %v4824_v3 = vmax.f32 %v336_v52, %v344_v60 }
 0x122   :  { %v4826_v4 = vmax.f32 %v297_v55, %v343_v63  ;;  %v4828_v5 = vmax.f32 %v338_v56, %v345_v1 }
 0x123   :  { %v354_v6 = vrot.slane %v4822_v2, 4  ;;  %v382_v7 = vmul.f32 %v4822_v2, %v4822_v2  ;;  %v366_v8 = vrot.slane %v4824_v3, 4  ;;  %v384_v9 = vmul.f32 %v4824_v3, %v4824_v3 }
 0x124   :  { %v360_v10 = vrot.slane %v4826_v4, 4  ;;  %v383_v11 = vmul.f32 %v4826_v4, %v4826_v4  ;;  %v372_v12 = vrot.slane %v4828_v5, 4  ;;  %v385_v13 = vmul.f32 %v4828_v5, %v4828_v5 }
 0x125   :  { %v355_v14 = vadd.f32 %v354_v6, %v4822_v2  ;;  %v386_v15 = vrot.slane %v382_v7, 4  ;;  %v367_v16 = vadd.f32 %v366_v8, %v4824_v3  ;;  %v398_v17 = vrot.slane %v384_v9, 4 }
 0x126   :  { %v361_v18 = vadd.f32 %v360_v10, %v4826_v4  ;;  %v392_v19 = vrot.slane %v383_v11, 4  ;;  %v373_v20 = vadd.f32 %v372_v12, %v4828_v5  ;;  %v404_v21 = vrot.slane %v385_v13, 4 }
 0x127   :  { %v356_v22 = vrot.slane %v355_v14, 2  ;;  %v387_v23 = vadd.f32 %v386_v15, %v382_v7  ;;  %v368_v24 = vrot.slane %v367_v16, 2  ;;  %v399_v25 = vadd.f32 %v398_v17, %v384_v9 }
 0x128   :  { %v362_v26 = vrot.slane %v361_v18, 2  ;;  %v393_v27 = vadd.f32 %v392_v19, %v383_v11  ;;  %v374_v28 = vrot.slane %v373_v20, 2  ;;  %v405_v29 = vadd.f32 %v404_v21, %v385_v13 }
 0x129   :  { %v357_v30 = vadd.f32 %v356_v22, %v355_v14  ;;  %v388_v31 = vrot.slane %v387_v23, 2  ;;  %v369_v32 = vadd.f32 %v368_v24, %v367_v16  ;;  %v400_v33 = vrot.slane %v399_v25, 2 }
 0x12a   :  { %v363_v34 = vadd.f32 %v362_v26, %v361_v18  ;;  %v394_v35 = vrot.slane %v393_v27, 2  ;;  %v375_v36 = vadd.f32 %v374_v28, %v373_v20  ;;  %v406_v37 = vrot.slane %v405_v29, 2 }
 0x12b   :  { %v358_v38 = vrot.slane %v357_v30, 1  ;;  %v389_v42 = vadd.f32 %v388_v31, %v387_v23  ;;  %v370_v45 = vrot.slane %v369_v32, 1  ;;  %v401_v46 = vadd.f32 %v400_v33, %v399_v25 }
 0x12c   :  { %v364_v47 = vrot.slane %v363_v34, 1  ;;  %v395_v48 = vadd.f32 %v394_v35, %v393_v27  ;;  %v376_v49 = vrot.slane %v375_v36, 1  ;;  %v407_v50 = vadd.f32 %v406_v37, %v405_v29 }
 0x12d   :  { %v359_v51 = vadd.f32 %v358_v38, %v357_v30  ;;  %v390_v52 = vrot.slane %v389_v42, 1  ;;  %v371_v53 = vadd.f32 %v370_v45, %v369_v32  ;;  %v402_v54 = vrot.slane %v401_v46, 1 }
 0x12e   :  { %v396_v55 = vrot.slane %v395_v48, 1  ;;  %v377_v56 = vadd.f32 %v376_v49, %v375_v36  ;;  %v408_v57 = vrot.slane %v407_v50, 1  ;;  %v365_v58 = vadd.f32 %v364_v47, %v363_v34 }
 0x12f   :  { %v378_v59 = vmul.f32 0.125, %v359_v51  ;;  %v391_v60 = vadd.f32 %v390_v52, %v389_v42  ;;  %v380_v61 = vmul.f32 0.125, %v371_v53  ;;  %v403_v62 = vadd.f32 %v402_v54, %v401_v46  ;;  %v351_v46 = vld [vmem:[#allocation5 + $0x20] ss:$8 sm:$0xf] }
 0x130   :  { %v397_v63 = vadd.f32 %v396_v55, %v395_v48  ;;  %v381_v1 = vmul.f32 0.125, %v377_v56  ;;  %v409_v6 = vadd.f32 %v408_v57, %v407_v50  ;;  %v379_v7 = vmul.f32 0.125, %v365_v58 }
 0x131   :  { %v410_v8 = vmul.f32 0.125, %v391_v60  ;;  %v414_v9 = vmul.f32 %v378_v59, %v378_v59  ;;  %v412_v10 = vmul.f32 0.125, %v403_v62  ;;  %v416_v11 = vmul.f32 %v380_v61, %v380_v61 }
 0x132   :  { %v411_v12 = vmul.f32 0.125, %v397_v63  ;;  %v413_v13 = vmul.f32 0.125, %v409_v6  ;;  %v417_v14 = vmul.f32 %v381_v1, %v381_v1  ;;  %v415_v15 = vmul.f32 %v379_v7, %v379_v7 }
 0x133   :  { %v418_v16 = vsub.f32 %v410_v8, %v414_v9  ;;  %v420_v17 = vsub.f32 %v412_v10, %v416_v11  ;;  %v4751_v28 = vmov 1966171168   ;;  %v353_v10 = vld [vmem:[#allocation5 + $0x40] ss:$8 sm:$0xf] }
 0x134   :  { %v421_v18 = vsub.f32 %v413_v13, %v417_v14  ;;  %v419_v19 = vsub.f32 %v411_v12, %v415_v15  ;;  %v441_v29 = vunpack.c.l.s4 %v4751_v28  ;;  %v4310_v14 = vld [vmem:[#allocation2 + $0x300] ss:$16 sps:$4 sm:$0xff]   ;;  %v4313_v15 = vld [vmem:[#allocation2 + $0x308] ss:$16 sps:$4 sm:$0xff]  }
 0x135   :  { %v422_v20 = vmax.f32 %v418_v16, 0.0  ;;  %v424_v21 = vmax.f32 %v420_v17, 0.0  ;;  %v4318_v17 = vld [vmem:[#allocation2 + $0x324] ss:$16 sps:$4 sm:$0xff]   ;;  %v4328_v28 = vld [vmem:[#allocation2 + $0x360] ss:$16 sps:$4 sm:$0xff]  }
 0x136   :  { %v425_v22 = vmax.f32 %v421_v18, 0.0  ;;  %v423_v23 = vmax.f32 %v419_v19, 0.0  ;;  %v442_v30 = vunpack.c.0.s8 %v441_v29  ;;  %v4321_v18 = vld [vmem:[#allocation2 + $0x32c] ss:$16 sps:$4 sm:$0xff]   ;;  %v4331_v29 = vld [vmem:[#allocation2 + $0x368] ss:$16 sps:$4 sm:$0xff]  }
 0x137   :  { %v426_v24 = vadd.f32 1e-05, %v422_v20  ;;  %v428_v25 = vadd.f32 1e-05, %v424_v21  ;;  %v4316_v20 = vld [vmem:[#allocation2 + $0x320] ss:$16 sps:$4 sm:$0xff]  }
 0x138   :  { %v429_v26 = vadd.f32 1e-05, %v425_v22  ;;  %v427_v27 = vadd.f32 1e-05, %v423_v23  ;;  %v4847_v33 = vsub.s32 %v442_v30, %v4804_v39  ;;  %v4319_v21 = vld [vmem:[#allocation2 + $0x328] ss:$16 sps:$4 sm:$0xff]  }
 0x139   :  { %4638 = vrsqrt.f32 %v426_v24  ;;  %v4324_v22 = vld [vmem:[#allocation2 + $0x344] ss:$16 sps:$4 sm:$0xff]   ;;  %v4327_v23 = vld [vmem:[#allocation2 + $0x34c] ss:$16 sps:$4 sm:$0xff]   ;;  %v4322_v24 = vld [vmem:[#allocation2 + $0x340] ss:$16 sps:$4 sm:$0xff]  }
 0x13a   :  { %4640 = vrsqrt.f32 %v428_v25  ;;  %v4325_v25 = vld [vmem:[#allocation2 + $0x348] ss:$16 sps:$4 sm:$0xff]   ;;  %v4336_v30 = vld [vmem:[#allocation2 + $0x384] ss:$16 sps:$4 sm:$0xff]  }
 0x13b   :  { %4642 = vrsqrt.f32 %v429_v26  ;;  %v4330_v26 = vld [vmem:[#allocation2 + $0x364] ss:$16 sps:$4 sm:$0xff]  }
 0x13c   :  { %4644 = vrsqrt.f32 %v427_v27  ;;  %v4333_v27 = vld [vmem:[#allocation2 + $0x36c] ss:$16 sps:$4 sm:$0xff]  }
 0x143   :  { %v4639_v31 = vpop.eup %4638 }
 0x144   :  { %v4641_v32 = vpop.eup %4640 }
 0x145   :  { %v4643_v34 = vpop.eup %4642 }
 0x146   :  { %v4645_v35 = vpop.eup %4644  ;;  %v439_v36 = vcombine.low %v4641_v32, %v4643_v34  ;;  %v4334_v32 = vld [vmem:[#allocation2 + $0x380] ss:$16 sps:$4 sm:$0xff]   ;;  %v4337_v34 = vld [vmem:[#allocation2 + $0x388] ss:$16 sps:$4 sm:$0xff]  }
 0x147   :  { %v438_v37 = vcombine.low %v4639_v31, %v4645_v35  ;;  %v4339_v31 = vld [vmem:[#allocation2 + $0x38c] ss:$16 sps:$4 sm:$0xff]   ;;  %v4342_v35 = vld [vmem:[#allocation2 + $0x3a4] ss:$16 sps:$4 sm:$0xff]  }
 0x148   :  { %v453_v38 = vrot.slane %v439_v36, %v4847_v33  ;;  %v4345_v36 = vld [vmem:[#allocation2 + $0x3ac] ss:$16 sps:$4 sm:$0xff]  }
 0x149   :  { %v446_v42 = vrot.slane %v438_v37, %v4847_v33  ;;  %v4340_v37 = vld [vmem:[#allocation2 + $0x3a0] ss:$16 sps:$4 sm:$0xff]  }
 0x14b   :  { %v454_v45 = vcombine.low %v446_v42, %v453_v38  ;;  %v4343_v38 = vld [vmem:[#allocation2 + $0x3a8] ss:$16 sps:$4 sm:$0xff]   ;;  %v4348_v42 = vld [vmem:[#allocation2 + $0x3c4] ss:$16 sps:$4 sm:$0xff]  }
 0x14d   :  { %v461_v47 = vrot.slane %v454_v45, %v4847_v33  ;;  %v4351_v45 = vld [vmem:[#allocation2 + $0x3cc] ss:$16 sps:$4 sm:$0xff]  }
 0x14f   :  { %v463_v48 = vmul.f32 %v461_v47, %v351_v46  ;;  %v4346_v46 = vld [vmem:[#allocation2 + $0x3c0] ss:$16 sps:$4 sm:$0xff]   ;;  %v4349_v47 = vld [vmem:[#allocation2 + $0x3c8] ss:$16 sps:$4 sm:$0xff]  }
 0x151   :  { %v468_v49 = vrot.slane %v463_v48, %v4807_v40  ;;  %v472_v50 = vrot.slane %v463_v48, %v4813_v43  ;;  %v476_v39 = vrot.slane %v463_v48, %v4810_v41  ;;  %v480_v51 = vrot.slane %v463_v48, %v4816_v44  ;;  %v4354_v48 = vld [vmem:[#allocation2 + $0x3e4] ss:$16 sps:$4 sm:$0xff]  }
 0x153   :  { %v485_v52 = vmul.f32 %v468_v49, %v378_v59  ;;  %v486_v53 = vmul.f32 %v472_v50, %v379_v7  ;;  %v487_v54 = vmul.f32 %v476_v39, %v380_v61  ;;  %v488_v55 = vmul.f32 %v480_v51, %v381_v1 }
 0x154   :  { %v520_v56 = vmul.f32 %v472_v50, %v4826_v4  ;;  %v519_v57 = vmul.f32 %v468_v49, %v4822_v2  ;;  %v522_v58 = vmul.f32 %v480_v51, %v4828_v5  ;;  %v521_v60 = vmul.f32 %v476_v39, %v4824_v3  ;;  %v4357_v49 = vld [vmem:[#allocation2 + $0x3ec] ss:$16 sps:$4 sm:$0xff]   ;;  %v4352_v50 = vld [vmem:[#allocation2 + $0x3e0] ss:$16 sps:$4 sm:$0xff]   ;;  %v4355_v39 = vld [vmem:[#allocation2 + $0x3e8] ss:$16 sps:$4 sm:$0xff]  }
 0x155   :  { %v493_v62 = vcombine.low %v485_v52, %v486_v53  ;;  %v494_v63 = vcombine.low %v487_v54, %v488_v55  ;;  %v4360_v51 = vld [vmem:[#allocation2 + $0x404] ss:$16 sps:$4 sm:$0xff]   ;;  %v4363_v52 = vld [vmem:[#allocation2 + $0x40c] ss:$16 sps:$4 sm:$0xff]   ;;  %v4358_v53 = vld [vmem:[#allocation2 + $0x400] ss:$16 sps:$4 sm:$0xff]  }
 0x156   :  { %v4361_v54 = vld [vmem:[#allocation2 + $0x408] ss:$16 sps:$4 sm:$0xff]   ;;  %v4366_v55 = vld [vmem:[#allocation2 + $0x424] ss:$16 sps:$4 sm:$0xff]  }
 0x157   :  { %v501_v6 = vrot.slane %v493_v62, %v4847_v33  ;;  %v508_v8 = vrot.slane %v494_v63, %v4847_v33  ;;  %v4375_v62 = vld [vmem:[#allocation2 + $0x44c] ss:$16 sps:$4 sm:$0xff]   ;;  %v4370_v63 = vld [vmem:[#allocation2 + $0x440] ss:$16 sps:$4 sm:$0xff]  }
 0x159   :  { %v509_v9 = vcombine.low %v501_v6, %v508_v8  ;;  %v4373_v6 = vld [vmem:[#allocation2 + $0x448] ss:$16 sps:$4 sm:$0xff]   ;;  %v4378_v8 = vld [vmem:[#allocation2 + $0x464] ss:$16 sps:$4 sm:$0xff]  }
 0x15b   :  { %v516_v59 = vrot.slane %v509_v9, %v4847_v33  ;;  %v4381_v9 = vld [vmem:[#allocation2 + $0x46c] ss:$16 sps:$4 sm:$0xff]  }
 0x15d   :  { %v518_v61 = vsub.f32 %v353_v10, %v516_v59  ;;  %v4376_v10 = vld [vmem:[#allocation2 + $0x460] ss:$16 sps:$4 sm:$0xff]   ;;  %v4379_v59 = vld [vmem:[#allocation2 + $0x468] ss:$16 sps:$4 sm:$0xff]  }
 0x15f   :  { %v531_v1 = vrot.slane %v518_v61, %v4813_v43  ;;  %v527_v4 = vrot.slane %v518_v61, %v4807_v40  ;;  %v539_v2 = vrot.slane %v518_v61, %v4816_v44  ;;  %v535_v5 = vrot.slane %v518_v61, %v4810_v41  ;;  %v4384_v61 = vld [vmem:[#allocation2 + $0x484] ss:$16 sps:$4 sm:$0xff]  }
 0x161   :  { %v545_v3 = vadd.f32 %v531_v1, %v520_v56  ;;  %v544_v7 = vadd.f32 %v527_v4, %v519_v57  ;;  %v547_v11 = vadd.f32 %v539_v2, %v522_v58  ;;  %v4867_v12 = vadd.f32 %v535_v5, %v521_v60  ;;  %v4369_v56 = vld [vmem:[#allocation2 + $0x42c] ss:$16 sps:$4 sm:$0xff]   ;;  %v4364_v57 = vld [vmem:[#allocation2 + $0x420] ss:$16 sps:$4 sm:$0xff]   ;;  %v4367_v58 = vld [vmem:[#allocation2 + $0x428] ss:$16 sps:$4 sm:$0xff]  }
 0x162   :  { %v4372_v60 = vld [vmem:[#allocation2 + $0x444] ss:$16 sps:$4 sm:$0xff]   ;;  %v4387_v1 = vld [vmem:[#allocation2 + $0x48c] ss:$16 sps:$4 sm:$0xff]   ;;  %v4382_v4 = vld [vmem:[#allocation2 + $0x480] ss:$16 sps:$4 sm:$0xff]  }
 0x163   :  { %v679_v13 = vpack.c.bf16 %v545_v3, %v545_v3  ;;  %v678_v16 = vpack.c.bf16 %v544_v7, %v544_v7  ;;  %v681_v19 = vpack.c.bf16 %v547_v11, %v547_v11  ;;  %v4385_v2 = vld [vmem:[#allocation2 + $0x488] ss:$16 sps:$4 sm:$0xff]   ;;  %v4390_v5 = vld [vmem:[#allocation2 + $0x4a4] ss:$16 sps:$4 sm:$0xff]   ;;  %v4393_v3 = vld [vmem:[#allocation2 + $0x4ac] ss:$16 sps:$4 sm:$0xff]  }
 0x164   :  { %v4388_v7 = vld [vmem:[#allocation2 + $0x4a0] ss:$16 sps:$4 sm:$0xff]   ;;  %v4391_v11 = vld [vmem:[#allocation2 + $0x4a8] ss:$16 sps:$4 sm:$0xff]  }
 0x165   :  { %1375 = vmatprep.mubr.bf16.mxu0 %v679_v13  ;;  %1457 = vmatprep.mubr.bf16.mxu1 %v679_v13  ;;  %v4396_v13 = vld [vmem:[#allocation2 + $0x4c4] ss:$16 sps:$4 sm:$0xff]  }
 0x166   :  { %1376 = vmatmul.mubr.bf16.vlgmr.msra.gmra.mrb[4].mxu0 %v678_v16  ;;  %1458 = vmatmul.mubr.bf16.vlgmr.msra.gmra.mrb[4].mxu1 %v678_v16  ;;  %v4397_v16 = vld [vmem:[#allocation2 + $0x4c8] ss:$16 sps:$4 sm:$0xff]  }
 0x167   :  { %1385 = vmatpush1.bf16.msra.mxu0 %v4310_v14  ;;  %1467 = vmatpush1.bf16.msra.mxu1 %v4313_v15  ;;  %v4399_v14 = vld [vmem:[#allocation2 + $0x4cc] ss:$16 sps:$4 sm:$0xff]   ;;  %v4394_v15 = vld [vmem:[#allocation2 + $0x4c0] ss:$16 sps:$4 sm:$0xff]  }
 0x168   :  { %1416 = vmatprep.mubr.bf16.mxu0 %v681_v19  ;;  %1498 = vmatprep.mubr.bf16.mxu1 %v681_v19  ;;  %v4400_v19 = vld [vmem:[#allocation2 + $0x4e0] ss:$16 sps:$4 sm:$0xff]  }
 0x169   :  { %1386 = vmatprep.subr.bf16.mxu0 %v4318_v17  ;;  %1468 = vmatprep.subr.bf16.mxu1 %v4321_v18  ;;  %v4402_v17 = vld [vmem:[#allocation2 + $0x4e4] ss:$16 sps:$4 sm:$0xff]   ;;  %v4405_v18 = vld [vmem:[#allocation2 + $0x4ec] ss:$16 sps:$4 sm:$0xff]  }
 0x16b   :  { %1387 = vmatpush1.bf16.msra.mxu0 %v4316_v20  ;;  %1469 = vmatpush1.bf16.msra.mxu1 %v4319_v21  ;;  %v4403_v20 = vld [vmem:[#allocation2 + $0x4e8] ss:$16 sps:$4 sm:$0xff]   ;;  %v680_v21 = vpack.c.bf16 %v4867_v12, %v4867_v12  ;;  %v4418_v12 = vld [vmem:[#allocation2 + $0x580] ss:$16 sps:$4 sm:$0xff]  }
 0x16c   :  { %1388 = vmatprep.subr.bf16.mxu0 %v4324_v22  ;;  %1470 = vmatprep.subr.bf16.mxu1 %v4327_v23  ;;  %v4408_v22 = vld [vmem:[#allocation2 + $0x504] ss:$16 sps:$4 sm:$0xff]   ;;  %v4406_v23 = vld [vmem:[#allocation2 + $0x500] ss:$16 sps:$4 sm:$0xff]  }
 0x16f   :  { %1389 = vmatpush1.bf16.msra.mxu0 %v4322_v24  ;;  %1471 = vmatpush1.bf16.msra.mxu1 %v4325_v25  ;;  %v4411_v24 = vld [vmem:[#allocation2 + $0x524] ss:$16 sps:$4 sm:$0xff]   ;;  %v4409_v25 = vld [vmem:[#allocation2 + $0x520] ss:$16 sps:$4 sm:$0xff]  }
 0x170   :  { %1390 = vmatprep.subr.bf16.mxu0 %v4330_v26  ;;  %1472 = vmatprep.subr.bf16.mxu1 %v4333_v27  ;;  %v4414_v26 = vld [vmem:[#allocation2 + $0x544] ss:$16 sps:$4 sm:$0xff]   ;;  %v4412_v27 = vld [vmem:[#allocation2 + $0x540] ss:$16 sps:$4 sm:$0xff]  }
 0x173   :  { %1391 = vmatpush1.bf16.msra.mxu0 %v4328_v28  ;;  %1473 = vmatpush1.bf16.msra.mxu1 %v4331_v29  ;;  %v4417_v28 = vld [vmem:[#allocation2 + $0x564] ss:$16 sps:$4 sm:$0xff]   ;;  %v4415_v29 = vld [vmem:[#allocation2 + $0x560] ss:$16 sps:$4 sm:$0xff]  }
 0x174   :  { %1392 = vmatprep.subr.bf16.mxu0 %v4336_v30  ;;  %1474 = vmatprep.subr.bf16.mxu1 %v4339_v31  ;;  %v4420_v30 = vld [vmem:[#allocation2 + $0x584] ss:$16 sps:$4 sm:$0xff]  }
 0x175   :  { %v4423_v31 = vld [vmem:[#allocation2 + $0x5a4] ss:$16 sps:$4 sm:$0xff]  }
 0x177   :  { %1393 = vmatpush1.bf16.msra.mxu0 %v4334_v32  ;;  %1475 = vmatpush1.bf16.msra.mxu1 %v4337_v34  ;;  %v4421_v32 = vld [vmem:[#allocation2 + $0x5a0] ss:$16 sps:$4 sm:$0xff]   ;;  %v4426_v34 = vld [vmem:[#allocation2 + $0x5c4] ss:$16 sps:$4 sm:$0xff]  }
 0x178   :  { %1394 = vmatprep.subr.bf16.mxu0 %v4342_v35  ;;  %1476 = vmatprep.subr.bf16.mxu1 %v4345_v36  ;;  %v4424_v35 = vld [vmem:[#allocation2 + $0x5c0] ss:$16 sps:$4 sm:$0xff]   ;;  %v4429_v36 = vld [vmem:[#allocation2 + $0x5e4] ss:$16 sps:$4 sm:$0xff]  }
 0x17b   :  { %1395 = vmatpush1.bf16.msra.mxu0 %v4340_v37  ;;  %1477 = vmatpush1.bf16.msra.mxu1 %v4343_v38  ;;  %v4433_v37 = vld [vmem:[#allocation2 + $0x608] ss:$16 sps:$4 sm:$0xff]   ;;  %v4427_v38 = vld [vmem:[#allocation2 + $0x5e0] ss:$16 sps:$4 sm:$0xff]  }
 0x17c   :  { %1396 = vmatprep.subr.bf16.mxu0 %v4348_v42  ;;  %1478 = vmatprep.subr.bf16.mxu1 %v4351_v45  ;;  %v4434_v42 = vld [vmem:[#allocation2 + $0x508] ss:$16 sps:$4 sm:$0xff]   ;;  %v4432_v45 = vld [vmem:[#allocation2 + $0x604] ss:$16 sps:$4 sm:$0xff]  }
 0x17f   :  { %1397 = vmatpush1.bf16.msra.mxu0 %v4346_v46  ;;  %1479 = vmatpush1.bf16.msra.mxu1 %v4349_v47  ;;  %v4438_v46 = vld [vmem:[#allocation2 + $0x628] ss:$16 sps:$4 sm:$0xff]  }
 0x180   :  { %1398 = vmatprep.subr.bf16.mxu0 %v4354_v48  ;;  %1480 = vmatprep.subr.bf16.mxu1 %v4357_v49  ;;  %v4439_v47 = vld [vmem:[#allocation2 + $0x528] ss:$16 sps:$4 sm:$0xff]   ;;  %v4430_v49 = vld [vmem:[#allocation2 + $0x600] ss:$16 sps:$4 sm:$0xff]  }
 0x181   :  { %v4443_v48 = vld [vmem:[#allocation2 + $0x648] ss:$16 sps:$4 sm:$0xff]  }
 0x183   :  { %1399 = vmatpush1.bf16.msra.mxu0 %v4352_v50  ;;  %1481 = vmatpush1.bf16.msra.mxu1 %v4355_v39  ;;  %v4437_v50 = vld [vmem:[#allocation2 + $0x624] ss:$16 sps:$4 sm:$0xff]   ;;  %v4444_v39 = vld [vmem:[#allocation2 + $0x548] ss:$16 sps:$4 sm:$0xff]  }
 0x184   :  { %1400 = vmatprep.subr.bf16.mxu0 %v4360_v51  ;;  %1482 = vmatprep.subr.bf16.mxu1 %v4363_v52  ;;  %v4448_v51 = vld [vmem:[#allocation2 + $0x668] ss:$16 sps:$4 sm:$0xff]   ;;  %v4435_v52 = vld [vmem:[#allocation2 + $0x620] ss:$16 sps:$4 sm:$0xff]  }
 0x187   :  { %1401 = vmatpush1.bf16.msra.mxu0 %v4358_v53  ;;  %1483 = vmatpush1.bf16.msra.mxu1 %v4361_v54  ;;  %v4442_v53 = vld [vmem:[#allocation2 + $0x644] ss:$16 sps:$4 sm:$0xff]   ;;  %v4449_v54 = vld [vmem:[#allocation2 + $0x568] ss:$16 sps:$4 sm:$0xff]  }
 0x188   :  { %1402 = vmatprep.subr.bf16.mxu0 %v4366_v55  ;;  %1484 = vmatprep.subr.bf16.mxu1 %v4369_v56  ;;  %v4453_v55 = vld [vmem:[#allocation2 + $0x688] ss:$16 sps:$4 sm:$0xff]   ;;  %v4440_v56 = vld [vmem:[#allocation2 + $0x640] ss:$16 sps:$4 sm:$0xff]  }
 0x18b   :  { %1403 = vmatpush1.bf16.msra.mxu0 %v4364_v57  ;;  %1485 = vmatpush1.bf16.msra.mxu1 %v4367_v58  ;;  %v4447_v57 = vld [vmem:[#allocation2 + $0x664] ss:$16 sps:$4 sm:$0xff]   ;;  %v4454_v58 = vld [vmem:[#allocation2 + $0x588] ss:$16 sps:$4 sm:$0xff]  }
 0x18c   :  { %1404 = vmatprep.subr.bf16.mxu0 %v4372_v60  ;;  %1486 = vmatprep.subr.bf16.mxu1 %v4375_v62  ;;  %v4458_v60 = vld [vmem:[#allocation2 + $0x6a8] ss:$16 sps:$4 sm:$0xff]   ;;  %v4445_v62 = vld [vmem:[#allocation2 + $0x660] ss:$16 sps:$4 sm:$0xff]  }
 0x18f   :  { %1405 = vmatpush1.bf16.msra.mxu0 %v4370_v63  ;;  %1487 = vmatpush1.bf16.msra.mxu1 %v4373_v6  ;;  %v4452_v63 = vld [vmem:[#allocation2 + $0x684] ss:$16 sps:$4 sm:$0xff]   ;;  %v4459_v6 = vld [vmem:[#allocation2 + $0x5a8] ss:$16 sps:$4 sm:$0xff]  }
 0x190   :  { %1406 = vmatprep.subr.bf16.mxu0 %v4378_v8  ;;  %1488 = vmatprep.subr.bf16.mxu1 %v4381_v9  ;;  %v4463_v8 = vld [vmem:[#allocation2 + $0x6c8] ss:$16 sps:$4 sm:$0xff]   ;;  %v4450_v9 = vld [vmem:[#allocation2 + $0x680] ss:$16 sps:$4 sm:$0xff]  }
 0x193   :  { %1407 = vmatpush1.bf16.msra.mxu0 %v4376_v10  ;;  %1489 = vmatpush1.bf16.msra.mxu1 %v4379_v59  ;;  %v4457_v10 = vld [vmem:[#allocation2 + $0x6a4] ss:$16 sps:$4 sm:$0xff]   ;;  %v4464_v59 = vld [vmem:[#allocation2 + $0x5c8] ss:$16 sps:$4 sm:$0xff]  }
 0x194   :  { %1408 = vmatprep.subr.bf16.mxu0 %v4384_v61  ;;  %1490 = vmatprep.subr.bf16.mxu1 %v4387_v1  ;;  %v4468_v61 = vld [vmem:[#allocation2 + $0x6e8] ss:$16 sps:$4 sm:$0xff]   ;;  %v4455_v1 = vld [vmem:[#allocation2 + $0x6a0] ss:$16 sps:$4 sm:$0xff]  }
 0x197   :  { %1409 = vmatpush1.bf16.msra.mxu0 %v4382_v4  ;;  %1491 = vmatpush1.bf16.msra.mxu1 %v4385_v2  ;;  %v4462_v4 = vld [vmem:[#allocation2 + $0x6c4] ss:$16 sps:$4 sm:$0xff]   ;;  %v4469_v2 = vld [vmem:[#allocation2 + $0x5e8] ss:$16 sps:$4 sm:$0xff]  }
 0x198   :  { %1410 = vmatprep.subr.bf16.mxu0 %v4390_v5  ;;  %1492 = vmatprep.subr.bf16.mxu1 %v4393_v3  ;;  %v4460_v5 = vld [vmem:[#allocation2 + $0x6c0] ss:$16 sps:$4 sm:$0xff]   ;;  %v4467_v3 = vld [vmem:[#allocation2 + $0x6e4] ss:$16 sps:$4 sm:$0xff]  }
 0x19b   :  { %1411 = vmatpush1.bf16.msra.mxu0 %v4388_v7  ;;  %1493 = vmatpush1.bf16.msra.mxu1 %v4391_v11  ;;  %v4465_v7 = vld [vmem:[#allocation2 + $0x6e0] ss:$16 sps:$4 sm:$0xff]   ;;  %v4472_v11 = vld [vmem:[#allocation2 + $0x704] ss:$16 sps:$4 sm:$0xff]  }
 0x19c   :  { %1412 = vmatprep.subr.bf16.mxu0 %v4396_v13  ;;  %1494 = vmatprep.subr.bf16.mxu1 %v4399_v14  ;;  %v4473_v13 = vld [vmem:[#allocation2 + $0x808] ss:$16 sps:$4 sm:$0xff]  }
 0x19d   :  { %v677_v14 = vld [vmem:[#allocation5 + $0x1] ss:$8 sm:$0xf] }
 0x19f   :  { %1413 = vmatpush1.bf16.msra.mxu0 %v4394_v15  ;;  %1495 = vmatpush1.bf16.msra.mxu1 %v4397_v16  ;;  %v686_v15 = vrot.slane %v677_v14, %v4807_v40  ;;  %v694_v16 = vrot.slane %v677_v14, %v4810_v41 }
 0x1a0   :  { %1414 = vmatprep.subr.bf16.mxu0 %v4402_v17  ;;  %1496 = vmatprep.subr.bf16.mxu1 %v4405_v18  ;;  %v690_v17 = vrot.slane %v677_v14, %v4813_v43  ;;  %v698_v18 = vrot.slane %v677_v14, %v4816_v44 }
 0x1a3   :  { %1415 = vmatpush1.bf16.msra.mxu0 %v4400_v19  ;;  %1497 = vmatpush1.bf16.msra.mxu1 %v4403_v20 }
 0x1a4   :  { %2375 = vmatprep.subr.bf16.mxu0 %v4408_v22  ;;  %4007 = vmatprep.subr.bf16.mxu1 %v4433_v37 }
 0x1a6   :  { %1417 = vmatmul.mubr.bf16.vlgmr.msra.gmra.mrb[4].mxu0 %v680_v21  ;;  %1499 = vmatmul.mubr.bf16.vlgmr.msra.gmra.mrb[4].mxu1 %v680_v21 }
 0x1a7   :  { %2376 = vmatpush1.bf16.msra.mxu0 %v4406_v23  ;;  %4008 = vmatpush3.bf16.msra.mxu1 %v4434_v42 }
 0x1a8   :  { %2377 = vmatprep.subr.bf16.mxu0 %v4411_v24  ;;  %4009 = vmatprep.subr.bf16.mxu1 %v4438_v46 }
 0x1ab   :  { %2378 = vmatpush1.bf16.msra.mxu0 %v4409_v25  ;;  %4010 = vmatpush3.bf16.msra.mxu1 %v4439_v47 }
 0x1ac   :  { %2379 = vmatprep.subr.bf16.mxu0 %v4414_v26  ;;  %4011 = vmatprep.subr.bf16.mxu1 %v4443_v48 }
 0x1af   :  { %2380 = vmatpush1.bf16.msra.mxu0 %v4412_v27  ;;  %4012 = vmatpush3.bf16.msra.mxu1 %v4444_v39 }
 0x1b0   :  { %2381 = vmatprep.subr.bf16.mxu0 %v4417_v28  ;;  %4013 = vmatprep.subr.bf16.mxu1 %v4448_v51 }
 0x1b3   :  { %2382 = vmatpush1.bf16.msra.mxu0 %v4415_v29  ;;  %4014 = vmatpush3.bf16.msra.mxu1 %v4449_v54 }
 0x1b4   :  { %2383 = vmatprep.subr.bf16.mxu0 %v4420_v30  ;;  %4015 = vmatprep.subr.bf16.mxu1 %v4453_v55 }
 0x1b7   :  { %2384 = vmatpush1.bf16.msra.mxu0 %v4418_v12  ;;  %4016 = vmatpush3.bf16.msra.mxu1 %v4454_v58 }
 0x1b8   :  { %2385 = vmatprep.subr.bf16.mxu0 %v4423_v31  ;;  %4017 = vmatprep.subr.bf16.mxu1 %v4458_v60 }
 0x1bb   :  { %2386 = vmatpush1.bf16.msra.mxu0 %v4421_v32  ;;  %4018 = vmatpush3.bf16.msra.mxu1 %v4459_v6 }
 0x1bc   :  { %2387 = vmatprep.subr.bf16.mxu0 %v4426_v34  ;;  %4019 = vmatprep.subr.bf16.mxu1 %v4463_v8 }
 0x1bf   :  { %2388 = vmatpush1.bf16.msra.mxu0 %v4424_v35  ;;  %4020 = vmatpush3.bf16.msra.mxu1 %v4464_v59 }
 0x1c0   :  { %2389 = vmatprep.subr.bf16.mxu0 %v4429_v36  ;;  %4021 = vmatprep.subr.bf16.mxu1 %v4468_v61 }
 0x1c3   :  { %2390 = vmatpush1.bf16.msra.mxu0 %v4427_v38  ;;  %4022 = vmatpush3.bf16.msra.mxu1 %v4469_v2 }
 0x1c4   :  { %2391 = vmatprep.subr.bf16.mxu0 %v4432_v45  ;;  %4029 = vmatprep.subr.bf16.mxu1 %v4473_v13 }
 0x1c7   :  { %2392 = vmatpush1.bf16.msra.mxu0 %v4430_v49 }
 0x1c8   :  { %2393 = vmatprep.subr.bf16.mxu0 %v4437_v50 }
 0x1cb   :  { %2394 = vmatpush1.bf16.msra.mxu0 %v4435_v52 }
 0x1cc   :  { %2395 = vmatprep.subr.bf16.mxu0 %v4442_v53 }
 0x1cf   :  { %2396 = vmatpush1.bf16.msra.mxu0 %v4440_v56 }
 0x1d0   :  { %2397 = vmatprep.subr.bf16.mxu0 %v4447_v57 }
 0x1d3   :  { %2398 = vmatpush1.bf16.msra.mxu0 %v4445_v62 }
 0x1d4   :  { %2399 = vmatprep.subr.bf16.mxu0 %v4452_v63 }
 0x1d7   :  { %2400 = vmatpush1.bf16.msra.mxu0 %v4450_v9 }
 0x1d8   :  { %2401 = vmatprep.subr.bf16.mxu0 %v4457_v10 }
 0x1db   :  { %2402 = vmatpush1.bf16.msra.mxu0 %v4455_v1 }
 0x1dc   :  { %2403 = vmatprep.subr.bf16.mxu0 %v4462_v4 }
 0x1df   :  { %2404 = vmatpush1.bf16.msra.mxu0 %v4460_v5 }
 0x1e0   :  { %2405 = vmatprep.subr.bf16.mxu0 %v4467_v3 }
 0x1e3   :  { %2406 = vmatpush1.bf16.msra.mxu0 %v4465_v7 }
 0x1e4   :  { %2416 = vmatprep.subr.bf16.mxu0 %v4472_v11 }
 0x279   :  { %v1418_v19 = vpop.f32.mrb[4].mxu0  ;;  %v1500_v20 = vpop.f32.mrb[4].mxu1 }
 0x27a   :  { %v4131_v21 = vadd.f32 %v1418_v19, %v686_v15  ;;  %v4133_v22 = vadd.f32 %v1500_v20, %v694_v16  ;;  %v1420_v23 = vpop.f32.mrb[5].mxu0  ;;  %v1502_v24 = vpop.f32.mrb[5].mxu1 }
 0x27b   :  { %v4132_v25 = vadd.f32 %v1420_v23, %v690_v17  ;;  %v4134_v26 = vadd.f32 %v1502_v24, %v698_v18  ;;  %v1422_v27 = vpop.f32.mrb[6].mxu0  ;;  %v1504_v28 = vpop.f32.mrb[6].mxu1 }
 0x27c   :  { %v1507_v29 = vmul.f32 0.01, %v4131_v21  ;;  %v1509_v30 = vmul.f32 0.01, %v4133_v22  ;;  %v1423_v12 = vpop.f32.mrb[7].mxu0  ;;  %v1505_v31 = vpop.f32.mrb[7].mxu1 }
 0x27d   :  { %v1508_v32 = vmul.f32 0.01, %v4132_v25  ;;  %v1510_v34 = vmul.f32 0.01, %v4134_v26 }
 0x27e   :  { %v4875_v35 = vmax.f32 %v4131_v21, %v1507_v29  ;;  %v4877_v36 = vmax.f32 %v4133_v22, %v1509_v30 }
 0x27f   :  { %v4879_v37 = vmax.f32 %v4132_v25, %v1508_v32  ;;  %v4881_v38 = vmax.f32 %v4134_v26, %v1510_v34 }
 0x280   :  { %v1519_v42 = vrot.slane %v4875_v35, 4  ;;  %v1547_v45 = vmul.f32 %v4875_v35, %v4875_v35  ;;  %v1531_v46 = vrot.slane %v4877_v36, 4  ;;  %v1549_v47 = vmul.f32 %v4877_v36, %v4877_v36 }
 0x281   :  { %v1525_v48 = vrot.slane %v4879_v37, 4  ;;  %v1548_v49 = vmul.f32 %v4879_v37, %v4879_v37  ;;  %v1537_v50 = vrot.slane %v4881_v38, 4  ;;  %v1550_v39 = vmul.f32 %v4881_v38, %v4881_v38 }
 0x282   :  { %v1520_v51 = vadd.f32 %v1519_v42, %v4875_v35  ;;  %v1551_v52 = vrot.slane %v1547_v45, 4  ;;  %v1532_v53 = vadd.f32 %v1531_v46, %v4877_v36  ;;  %v1563_v54 = vrot.slane %v1549_v47, 4 }
 0x283   :  { %v1526_v55 = vadd.f32 %v1525_v48, %v4879_v37  ;;  %v1557_v56 = vrot.slane %v1548_v49, 4  ;;  %v1538_v57 = vadd.f32 %v1537_v50, %v4881_v38  ;;  %v1569_v58 = vrot.slane %v1550_v39, 4 }
 0x284   :  { %v1521_v60 = vrot.slane %v1520_v51, 2  ;;  %v1552_v62 = vadd.f32 %v1551_v52, %v1547_v45  ;;  %v1533_v63 = vrot.slane %v1532_v53, 2  ;;  %v1564_v6 = vadd.f32 %v1563_v54, %v1549_v47 }
 0x285   :  { %v1527_v8 = vrot.slane %v1526_v55, 2  ;;  %v1558_v9 = vadd.f32 %v1557_v56, %v1548_v49  ;;  %v1539_v10 = vrot.slane %v1538_v57, 2  ;;  %v1570_v59 = vadd.f32 %v1569_v58, %v1550_v39 }
 0x286   :  { %v1522_v61 = vadd.f32 %v1521_v60, %v1520_v51  ;;  %v1553_v1 = vrot.slane %v1552_v62, 2  ;;  %v1534_v4 = vadd.f32 %v1533_v63, %v1532_v53  ;;  %v1565_v2 = vrot.slane %v1564_v6, 2 }
 0x287   :  { %v1528_v5 = vadd.f32 %v1527_v8, %v1526_v55  ;;  %v1559_v3 = vrot.slane %v1558_v9, 2  ;;  %v1540_v7 = vadd.f32 %v1539_v10, %v1538_v57  ;;  %v1571_v11 = vrot.slane %v1570_v59, 2 }
 0x288   :  { %v1523_v13 = vrot.slane %v1522_v61, 1  ;;  %v1554_v14 = vadd.f32 %v1553_v1, %v1552_v62  ;;  %v1535_v15 = vrot.slane %v1534_v4, 1  ;;  %v1566_v16 = vadd.f32 %v1565_v2, %v1564_v6 }
 0x289   :  { %v1529_v17 = vrot.slane %v1528_v5, 1  ;;  %v1560_v18 = vadd.f32 %v1559_v3, %v1558_v9  ;;  %v1541_v19 = vrot.slane %v1540_v7, 1  ;;  %v1572_v20 = vadd.f32 %v1571_v11, %v1570_v59  ;;  %v1516_v11 = vld [vmem:[#allocation5 + $0x21] ss:$8 sm:$0xf] }
 0x28a   :  { %v1524_v21 = vadd.f32 %v1523_v13, %v1522_v61  ;;  %v1555_v22 = vrot.slane %v1554_v14, 1  ;;  %v1536_v23 = vadd.f32 %v1535_v15, %v1534_v4  ;;  %v1567_v24 = vrot.slane %v1566_v16, 1 }
 0x28b   :  { %v1561_v25 = vrot.slane %v1560_v18, 1  ;;  %v1542_v26 = vadd.f32 %v1541_v19, %v1540_v7  ;;  %v1573_v27 = vrot.slane %v1572_v20, 1  ;;  %v1530_v28 = vadd.f32 %v1529_v17, %v1528_v5 }
 0x28c   :  { %v1543_v29 = vmul.f32 0.125, %v1524_v21  ;;  %v1556_v30 = vadd.f32 %v1555_v22, %v1554_v14  ;;  %v1545_v12 = vmul.f32 0.125, %v1536_v23  ;;  %v1568_v31 = vadd.f32 %v1567_v24, %v1566_v16 }
 0x28d   :  { %v1562_v32 = vadd.f32 %v1561_v25, %v1560_v18  ;;  %v1546_v34 = vmul.f32 0.125, %v1542_v26  ;;  %v1574_v42 = vadd.f32 %v1573_v27, %v1572_v20  ;;  %v1544_v45 = vmul.f32 0.125, %v1530_v28 }
 0x28e   :  { %v1575_v46 = vmul.f32 0.125, %v1556_v30  ;;  %v1579_v47 = vmul.f32 %v1543_v29, %v1543_v29  ;;  %v1577_v48 = vmul.f32 0.125, %v1568_v31  ;;  %v1581_v49 = vmul.f32 %v1545_v12, %v1545_v12 }
 0x28f   :  { %v1576_v50 = vmul.f32 0.125, %v1562_v32  ;;  %v1578_v39 = vmul.f32 0.125, %v1574_v42  ;;  %v1582_v51 = vmul.f32 %v1546_v34, %v1546_v34  ;;  %v1580_v52 = vmul.f32 %v1544_v45, %v1544_v45  ;;  %v1518_v42 = vld [vmem:[#allocation5 + $0x41] ss:$8 sm:$0xf] }
 0x290   :  { %v1583_v53 = vsub.f32 %v1575_v46, %v1579_v47  ;;  %v1585_v54 = vsub.f32 %v1577_v48, %v1581_v49  ;;  %v4470_v49 = vld [vmem:[#allocation2 + $0x700] ss:$16 sps:$4 sm:$0xff]  }
 0x291   :  { %v1586_v55 = vsub.f32 %v1578_v39, %v1582_v51  ;;  %v1584_v56 = vsub.f32 %v1576_v50, %v1580_v52  ;;  %v4474_v39 = vld [vmem:[#allocation2 + $0x708] ss:$16 sps:$4 sm:$0xff]   ;;  %v4477_v51 = vld [vmem:[#allocation2 + $0x724] ss:$16 sps:$4 sm:$0xff]  }
 0x292   :  { %v1587_v57 = vmax.f32 %v1583_v53, 0.0  ;;  %v1589_v58 = vmax.f32 %v1585_v54, 0.0  ;;  %v4478_v52 = vld [vmem:[#allocation2 + $0x828] ss:$16 sps:$4 sm:$0xff]  }
 0x293   :  { %v1590_v60 = vmax.f32 %v1586_v55, 0.0  ;;  %v1588_v62 = vmax.f32 %v1584_v56, 0.0  ;;  %v4479_v54 = vld [vmem:[#allocation2 + $0x728] ss:$16 sps:$4 sm:$0xff]   ;;  %v4482_v55 = vld [vmem:[#allocation2 + $0x744] ss:$16 sps:$4 sm:$0xff]  }
 0x294   :  { %v1591_v63 = vadd.f32 1e-05, %v1587_v57  ;;  %v1593_v6 = vadd.f32 1e-05, %v1589_v58  ;;  %v4483_v56 = vld [vmem:[#allocation2 + $0x848] ss:$16 sps:$4 sm:$0xff]  }
 0x295   :  { %v1594_v8 = vadd.f32 1e-05, %v1590_v60  ;;  %v1592_v9 = vadd.f32 1e-05, %v1588_v62  ;;  %v4480_v57 = vld [vmem:[#allocation2 + $0x740] ss:$16 sps:$4 sm:$0xff]  }
 0x296   :  { %4646 = vrsqrt.f32 %v1591_v63  ;;  %v4484_v58 = vld [vmem:[#allocation2 + $0x748] ss:$16 sps:$4 sm:$0xff]   ;;  %v4487_v60 = vld [vmem:[#allocation2 + $0x764] ss:$16 sps:$4 sm:$0xff]   ;;  %v4485_v63 = vld [vmem:[#allocation2 + $0x760] ss:$16 sps:$4 sm:$0xff]  }
 0x297   :  { %4648 = vrsqrt.f32 %v1593_v6  ;;  %v4488_v62 = vld [vmem:[#allocation2 + $0x868] ss:$16 sps:$4 sm:$0xff]  }
 0x298   :  { %4650 = vrsqrt.f32 %v1594_v8  ;;  %v4489_v6 = vld [vmem:[#allocation2 + $0x768] ss:$16 sps:$4 sm:$0xff]   ;;  %v4492_v8 = vld [vmem:[#allocation2 + $0x784] ss:$16 sps:$4 sm:$0xff]  }
 0x299   :  { %4652 = vrsqrt.f32 %v1592_v9  ;;  %v4493_v9 = vld [vmem:[#allocation2 + $0x888] ss:$16 sps:$4 sm:$0xff]  }
 0x2a0   :  { %v4647_v10 = vpop.eup %4646 }
 0x2a1   :  { %v4649_v59 = vpop.eup %4648 }
 0x2a2   :  { %v4651_v61 = vpop.eup %4650 }
 0x2a3   :  { %v4653_v1 = vpop.eup %4652  ;;  %v1604_v4 = vcombine.low %v4649_v59, %v4651_v61  ;;  %v4494_v59 = vld [vmem:[#allocation2 + $0x788] ss:$16 sps:$4 sm:$0xff]   ;;  %v4497_v61 = vld [vmem:[#allocation2 + $0x7a4] ss:$16 sps:$4 sm:$0xff]  }
 0x2a4   :  { %v1603_v2 = vcombine.low %v4647_v10, %v4653_v1  ;;  %v4490_v10 = vld [vmem:[#allocation2 + $0x780] ss:$16 sps:$4 sm:$0xff]   ;;  %v4498_v1 = vld [vmem:[#allocation2 + $0x8a8] ss:$16 sps:$4 sm:$0xff]  }
 0x2a5   :  { %v1618_v5 = vrot.slane %v1604_v4, %v4847_v33  ;;  %v4495_v4 = vld [vmem:[#allocation2 + $0x7a0] ss:$16 sps:$4 sm:$0xff]  }
 0x2a6   :  { %v1611_v3 = vrot.slane %v1603_v2, %v4847_v33  ;;  %v4499_v2 = vld [vmem:[#allocation2 + $0x7a8] ss:$16 sps:$4 sm:$0xff]  }
 0x2a8   :  { %v1619_v7 = vcombine.low %v1611_v3, %v1618_v5  ;;  %v4502_v5 = vld [vmem:[#allocation2 + $0x7c4] ss:$16 sps:$4 sm:$0xff]   ;;  %v4503_v3 = vld [vmem:[#allocation2 + $0x8c8] ss:$16 sps:$4 sm:$0xff]  }
 0x2aa   :  { %v1626_v13 = vrot.slane %v1619_v7, %v4847_v33  ;;  %v4500_v7 = vld [vmem:[#allocation2 + $0x7c0] ss:$16 sps:$4 sm:$0xff]  }
 0x2ac   :  { %v1628_v14 = vmul.f32 %v1626_v13, %v1516_v11  ;;  %v4504_v11 = vld [vmem:[#allocation2 + $0x7c8] ss:$16 sps:$4 sm:$0xff]   ;;  %v4507_v13 = vld [vmem:[#allocation2 + $0x7e4] ss:$16 sps:$4 sm:$0xff]  }
 0x2ae   :  { %v1633_v15 = vrot.slane %v1628_v14, %v4807_v40  ;;  %v1637_v16 = vrot.slane %v1628_v14, %v4813_v43  ;;  %v1641_v17 = vrot.slane %v1628_v14, %v4810_v41  ;;  %v1645_v18 = vrot.slane %v1628_v14, %v4816_v44  ;;  %v4508_v14 = vld [vmem:[#allocation2 + $0x8e8] ss:$16 sps:$4 sm:$0xff]  }
 0x2b0   :  { %v1650_v19 = vmul.f32 %v1633_v15, %v1543_v29  ;;  %v1651_v20 = vmul.f32 %v1637_v16, %v1544_v45  ;;  %v1652_v21 = vmul.f32 %v1641_v17, %v1545_v12  ;;  %v1653_v22 = vmul.f32 %v1645_v18, %v1546_v34 }
 0x2b1   :  { %v1685_v23 = vmul.f32 %v1637_v16, %v4879_v37  ;;  %v1684_v24 = vmul.f32 %v1633_v15, %v4875_v35  ;;  %v1687_v25 = vmul.f32 %v1645_v18, %v4881_v38  ;;  %v1686_v26 = vmul.f32 %v1641_v17, %v4877_v36  ;;  %v4505_v15 = vld [vmem:[#allocation2 + $0x7e0] ss:$16 sps:$4 sm:$0xff]   ;;  %v4509_v16 = vld [vmem:[#allocation2 + $0x7e8] ss:$16 sps:$4 sm:$0xff]   ;;  %v4512_v17 = vld [vmem:[#allocation2 + $0x804] ss:$16 sps:$4 sm:$0xff]  }
 0x2b2   :  { %v1658_v27 = vcombine.low %v1650_v19, %v1651_v20  ;;  %v1659_v28 = vcombine.low %v1652_v21, %v1653_v22  ;;  %v4510_v18 = vld [vmem:[#allocation2 + $0x800] ss:$16 sps:$4 sm:$0xff]   ;;  %v4515_v20 = vld [vmem:[#allocation2 + $0x824] ss:$16 sps:$4 sm:$0xff]  }
 0x2b3   :  { %v4513_v21 = vld [vmem:[#allocation2 + $0x820] ss:$16 sps:$4 sm:$0xff]   ;;  %v4518_v22 = vld [vmem:[#allocation2 + $0x844] ss:$16 sps:$4 sm:$0xff]  }
 0x2b4   :  { %v1666_v30 = vrot.slane %v1658_v27, %v4847_v33  ;;  %v1673_v31 = vrot.slane %v1659_v28, %v4847_v33  ;;  %v4522_v27 = vld [vmem:[#allocation2 + $0x880] ss:$16 sps:$4 sm:$0xff]   ;;  %v4527_v28 = vld [vmem:[#allocation2 + $0x8a4] ss:$16 sps:$4 sm:$0xff]  }
 0x2b6   :  { %v1674_v32 = vcombine.low %v1666_v30, %v1673_v31  ;;  %v4525_v30 = vld [vmem:[#allocation2 + $0x8a0] ss:$16 sps:$4 sm:$0xff]   ;;  %v4530_v31 = vld [vmem:[#allocation2 + $0x8c4] ss:$16 sps:$4 sm:$0xff]  }
 0x2b8   :  { %v1681_v29 = vrot.slane %v1674_v32, %v4847_v33  ;;  %v4528_v32 = vld [vmem:[#allocation2 + $0x8c0] ss:$16 sps:$4 sm:$0xff]  }
 0x2ba   :  { %v1683_v12 = vsub.f32 %v1518_v42, %v1681_v29  ;;  %v4533_v42 = vld [vmem:[#allocation2 + $0x8e4] ss:$16 sps:$4 sm:$0xff]   ;;  %v4531_v29 = vld [vmem:[#allocation2 + $0x8e0] ss:$16 sps:$4 sm:$0xff]  }
 0x2bc   :  { %v1696_v34 = vrot.slane %v1683_v12, %v4813_v43  ;;  %v1692_v37 = vrot.slane %v1683_v12, %v4807_v40  ;;  %v1704_v35 = vrot.slane %v1683_v12, %v4816_v44  ;;  %v1700_v38 = vrot.slane %v1683_v12, %v4810_v41  ;;  %v4475_v44 = vld [vmem:[#allocation2 + $0x720] ss:$16 sps:$4 sm:$0xff]   ;;  %v4536_v12 = vld [vmem:[#allocation2 + $0x904] ss:$16 sps:$4 sm:$0xff]  }
 0x2be   :  { %v1710_v36 = vadd.f32 %v1696_v34, %v1685_v23  ;;  %v1709_v45 = vadd.f32 %v1692_v37, %v1684_v24  ;;  %v1712_v46 = vadd.f32 %v1704_v35, %v1687_v25  ;;  %v4917_v47 = vadd.f32 %v1700_v38, %v1686_v26  ;;  %v4516_v23 = vld [vmem:[#allocation2 + $0x840] ss:$16 sps:$4 sm:$0xff]   ;;  %v4521_v24 = vld [vmem:[#allocation2 + $0x864] ss:$16 sps:$4 sm:$0xff]  }
 0x2bf   :  { %v4519_v25 = vld [vmem:[#allocation2 + $0x860] ss:$16 sps:$4 sm:$0xff]   ;;  %v4524_v26 = vld [vmem:[#allocation2 + $0x884] ss:$16 sps:$4 sm:$0xff]  }
 0x2c0   :  { %v1844_v48 = vpack.c.bf16 %v1710_v36, %v1710_v36  ;;  %v1843_v50 = vpack.c.bf16 %v1709_v45, %v1709_v45  ;;  %v1846_v53 = vpack.c.bf16 %v1712_v46, %v1712_v46  ;;  %v1845_v19 = vpack.c.bf16 %v4917_v47, %v4917_v47  ;;  %v4534_v34 = vld [vmem:[#allocation2 + $0x900] ss:$16 sps:$4 sm:$0xff]   ;;  %v4539_v37 = vld [vmem:[#allocation2 + $0x924] ss:$16 sps:$4 sm:$0xff]  }
 0x2c1   :  { %v4537_v35 = vld [vmem:[#allocation2 + $0x920] ss:$16 sps:$4 sm:$0xff]   ;;  %v4542_v38 = vld [vmem:[#allocation2 + $0x944] ss:$16 sps:$4 sm:$0xff]  }
 0x2c2   :  { %2407 = vmatprep.mubr.bf16.mxu0 %v1844_v48  ;;  %2489 = vmatprep.mubr.bf16.mxu1 %v1844_v48  ;;  %v4540_v36 = vld [vmem:[#allocation2 + $0x940] ss:$16 sps:$4 sm:$0xff]   ;;  %v4545_v45 = vld [vmem:[#allocation2 + $0x964] ss:$16 sps:$4 sm:$0xff]  }
 0x2c3   :  { %2408 = vmatmul.mubr.bf16.vlgmr.msra.gmra.mrb[8].mxu0 %v1843_v50  ;;  %2490 = vmatmul.mubr.bf16.vlgmr.msra.gmra.mrb[8].mxu1 %v1843_v50  ;;  %v4543_v46 = vld [vmem:[#allocation2 + $0x960] ss:$16 sps:$4 sm:$0xff]   ;;  %v4548_v47 = vld [vmem:[#allocation2 + $0x984] ss:$16 sps:$4 sm:$0xff]  }
 0x2c4   :  { %2417 = vmatpush1.bf16.msra.mxu0 %v4470_v49  ;;  %4030 = vmatpush3.bf16.msra.mxu1 %v4474_v39  ;;  %v4546_v48 = vld [vmem:[#allocation2 + $0x980] ss:$16 sps:$4 sm:$0xff]   ;;  %v4551_v49 = vld [vmem:[#allocation2 + $0x9a4] ss:$16 sps:$4 sm:$0xff]  }
 0x2c5   :  { %2448 = vmatprep.mubr.bf16.mxu0 %v1846_v53  ;;  %2529 = vmatprep.mubr.bf16.mxu1 %v1846_v53  ;;  %v4549_v50 = vld [vmem:[#allocation2 + $0x9a0] ss:$16 sps:$4 sm:$0xff]  }
 0x2c6   :  { %2418 = vmatprep.subr.bf16.mxu0 %v4477_v51  ;;  %4031 = vmatprep.subr.bf16.mxu1 %v4478_v52  ;;  %v4552_v39 = vld [vmem:[#allocation2 + $0x9c0] ss:$16 sps:$4 sm:$0xff]   ;;  %v4554_v51 = vld [vmem:[#allocation2 + $0x9c4] ss:$16 sps:$4 sm:$0xff]  }
 0x2c7   :  { %v4557_v52 = vld [vmem:[#allocation2 + $0x9e4] ss:$16 sps:$4 sm:$0xff]   ;;  %v4555_v53 = vld [vmem:[#allocation2 + $0x9e0] ss:$16 sps:$4 sm:$0xff]  }
 0x2c8   :  { %2419 = vmatpush1.bf16.msra.mxu0 %v4475_v44  ;;  %4032 = vmatpush3.bf16.msra.mxu1 %v4479_v54  ;;  %v4560_v44 = vld [vmem:[#allocation2 + $0xa04] ss:$16 sps:$4 sm:$0xff]   ;;  %v4558_v54 = vld [vmem:[#allocation2 + $0xa00] ss:$16 sps:$4 sm:$0xff]  }
 0x2c9   :  { %2420 = vmatprep.subr.bf16.mxu0 %v4482_v55  ;;  %4033 = vmatprep.subr.bf16.mxu1 %v4483_v56  ;;  %v4563_v55 = vld [vmem:[#allocation2 + $0xa24] ss:$16 sps:$4 sm:$0xff]   ;;  %v4561_v56 = vld [vmem:[#allocation2 + $0xa20] ss:$16 sps:$4 sm:$0xff]  }
 0x2cc   :  { %2421 = vmatpush1.bf16.msra.mxu0 %v4480_v57  ;;  %4034 = vmatpush3.bf16.msra.mxu1 %v4484_v58  ;;  %v4566_v57 = vld [vmem:[#allocation2 + $0xa44] ss:$16 sps:$4 sm:$0xff]   ;;  %v4564_v58 = vld [vmem:[#allocation2 + $0xa40] ss:$16 sps:$4 sm:$0xff]  }
 0x2cd   :  { %2422 = vmatprep.subr.bf16.mxu0 %v4487_v60  ;;  %4035 = vmatprep.subr.bf16.mxu1 %v4488_v62  ;;  %v4569_v60 = vld [vmem:[#allocation2 + $0xa64] ss:$16 sps:$4 sm:$0xff]   ;;  %v4567_v62 = vld [vmem:[#allocation2 + $0xa60] ss:$16 sps:$4 sm:$0xff]  }
 0x2d0   :  { %2423 = vmatpush1.bf16.msra.mxu0 %v4485_v63  ;;  %4036 = vmatpush3.bf16.msra.mxu1 %v4489_v6  ;;  %v4572_v63 = vld [vmem:[#allocation2 + $0xa84] ss:$16 sps:$4 sm:$0xff]   ;;  %v4570_v6 = vld [vmem:[#allocation2 + $0xa80] ss:$16 sps:$4 sm:$0xff]  }
 0x2d1   :  { %2424 = vmatprep.subr.bf16.mxu0 %v4492_v8  ;;  %4037 = vmatprep.subr.bf16.mxu1 %v4493_v9  ;;  %v4575_v8 = vld [vmem:[#allocation2 + $0xaa4] ss:$16 sps:$4 sm:$0xff]   ;;  %v4573_v9 = vld [vmem:[#allocation2 + $0xaa0] ss:$16 sps:$4 sm:$0xff]  }
 0x2d4   :  { %2425 = vmatpush1.bf16.msra.mxu0 %v4490_v10  ;;  %4038 = vmatpush3.bf16.msra.mxu1 %v4494_v59  ;;  %v4578_v10 = vld [vmem:[#allocation2 + $0xac4] ss:$16 sps:$4 sm:$0xff]   ;;  %v4576_v59 = vld [vmem:[#allocation2 + $0xac0] ss:$16 sps:$4 sm:$0xff]  }
 0x2d5   :  { %2426 = vmatprep.subr.bf16.mxu0 %v4497_v61  ;;  %4039 = vmatprep.subr.bf16.mxu1 %v4498_v1  ;;  %v4581_v61 = vld [vmem:[#allocation2 + $0xae4] ss:$16 sps:$4 sm:$0xff]  }
 0x2d8   :  { %2427 = vmatpush1.bf16.msra.mxu0 %v4495_v4  ;;  %4040 = vmatpush3.bf16.msra.mxu1 %v4499_v2  ;;  %v4579_v4 = vld [vmem:[#allocation2 + $0xae0] ss:$16 sps:$4 sm:$0xff]  }
 0x2d9   :  { %2428 = vmatprep.subr.bf16.mxu0 %v4502_v5  ;;  %4041 = vmatprep.subr.bf16.mxu1 %v4503_v3 }
 0x2dc   :  { %2429 = vmatpush1.bf16.msra.mxu0 %v4500_v7  ;;  %4042 = vmatpush3.bf16.msra.mxu1 %v4504_v11  ;;  %v4584_v11 = vld [vmem:[#allocation2 + $0xb04] ss:$16 sps:$4 sm:$0xff]  }
 0x2dd   :  { %2430 = vmatprep.subr.bf16.mxu0 %v4507_v13  ;;  %4043 = vmatprep.subr.bf16.mxu1 %v4508_v14  ;;  %v1842_v13 = vld [vmem:[#allocation5 + $0x2] ss:$8 sm:$0x7] }
 0x2de   :  { %v1859_v14 = vrot.slane %v1842_v13, %v4810_v41 }
 0x2e0   :  { %2431 = vmatpush1.bf16.msra.mxu0 %v4505_v15  ;;  %4044 = vmatpush3.bf16.msra.mxu1 %v4509_v16 }
 0x2e1   :  { %2432 = vmatprep.subr.bf16.mxu0 %v4512_v17  ;;  %3008 = vmatprep.subr.bf16.mxu1 %v4536_v12 }
 0x2e3   :  { %2530 = vmatmul.mubr.bf16.vlgmr.msra.gmra.mrb[12].mxu1 %v1845_v19 }
 0x2e4   :  { %2433 = vmatpush1.bf16.msra.mxu0 %v4510_v18  ;;  %3009 = vmatpush1.bf16.msra.mxu1 %v4534_v34 }
 0x2e5   :  { %2434 = vmatprep.subr.bf16.mxu0 %v4515_v20  ;;  %3010 = vmatprep.subr.bf16.mxu1 %v4539_v37 }
 0x2e8   :  { %2435 = vmatpush1.bf16.msra.mxu0 %v4513_v21  ;;  %3011 = vmatpush1.bf16.msra.mxu1 %v4537_v35 }
 0x2e9   :  { %2436 = vmatprep.subr.bf16.mxu0 %v4518_v22  ;;  %3012 = vmatprep.subr.bf16.mxu1 %v4542_v38 }
 0x2ec   :  { %2437 = vmatpush1.bf16.msra.mxu0 %v4516_v23  ;;  %3013 = vmatpush1.bf16.msra.mxu1 %v4540_v36 }
 0x2ed   :  { %2438 = vmatprep.subr.bf16.mxu0 %v4521_v24  ;;  %3014 = vmatprep.subr.bf16.mxu1 %v4545_v45 }
 0x2f0   :  { %2439 = vmatpush1.bf16.msra.mxu0 %v4519_v25  ;;  %3015 = vmatpush1.bf16.msra.mxu1 %v4543_v46 }
 0x2f1   :  { %2440 = vmatprep.subr.bf16.mxu0 %v4524_v26  ;;  %3016 = vmatprep.subr.bf16.mxu1 %v4548_v47 }
 0x2f4   :  { %2441 = vmatpush1.bf16.msra.mxu0 %v4522_v27  ;;  %3017 = vmatpush1.bf16.msra.mxu1 %v4546_v48 }
 0x2f5   :  { %2442 = vmatprep.subr.bf16.mxu0 %v4527_v28  ;;  %3018 = vmatprep.subr.bf16.mxu1 %v4551_v49 }
 0x2f8   :  { %2443 = vmatpush1.bf16.msra.mxu0 %v4525_v30  ;;  %3019 = vmatpush1.bf16.msra.mxu1 %v4549_v50 }
 0x2f9   :  { %2444 = vmatprep.subr.bf16.mxu0 %v4530_v31  ;;  %3020 = vmatprep.subr.bf16.mxu1 %v4554_v51 }
 0x2fc   :  { %2445 = vmatpush1.bf16.msra.mxu0 %v4528_v32  ;;  %3021 = vmatpush1.bf16.msra.mxu1 %v4552_v39 }
 0x2fd   :  { %2446 = vmatprep.subr.bf16.mxu0 %v4533_v42  ;;  %3022 = vmatprep.subr.bf16.mxu1 %v4557_v52  ;;  %v1851_v42 = vrot.slane %v1842_v13, %v4807_v40 }
 0x300   :  { %2447 = vmatpush1.bf16.msra.mxu0 %v4531_v29  ;;  %3023 = vmatpush1.bf16.msra.mxu1 %v4555_v53  ;;  %v1855_v29 = vrot.slane %v1842_v13, %v4813_v43 }
 0x301   :  { %3024 = vmatprep.subr.bf16.mxu1 %v4560_v44 }
 0x303   :  { %2449 = vmatmul.mubr.bf16.vlgmr.msra.gmra.mrb[8].mxu0 %v1845_v19 }
 0x304   :  { %3025 = vmatpush1.bf16.msra.mxu1 %v4558_v54 }
 0x305   :  { %3026 = vmatprep.subr.bf16.mxu1 %v4563_v55 }
 0x308   :  { %3027 = vmatpush1.bf16.msra.mxu1 %v4561_v56 }
 0x309   :  { %3028 = vmatprep.subr.bf16.mxu1 %v4566_v57 }
 0x30c   :  { %3029 = vmatpush1.bf16.msra.mxu1 %v4564_v58 }
 0x30d   :  { %3030 = vmatprep.subr.bf16.mxu1 %v4569_v60 }
 0x310   :  { %3031 = vmatpush1.bf16.msra.mxu1 %v4567_v62 }
 0x311   :  { %3032 = vmatprep.subr.bf16.mxu1 %v4572_v63 }
 0x314   :  { %3033 = vmatpush1.bf16.msra.mxu1 %v4570_v6 }
 0x315   :  { %3034 = vmatprep.subr.bf16.mxu1 %v4575_v8 }
 0x318   :  { %3035 = vmatpush1.bf16.msra.mxu1 %v4573_v9 }
 0x319   :  { %3036 = vmatprep.subr.bf16.mxu1 %v4578_v10 }
 0x31c   :  { %3037 = vmatpush1.bf16.msra.mxu1 %v4576_v59 }
 0x31d   :  { %3038 = vmatprep.subr.bf16.mxu1 %v4581_v61 }
 0x320   :  { %3039 = vmatpush1.bf16.msra.mxu1 %v4579_v4 }
 0x321   :  { %3049 = vmatprep.subr.bf16.mxu1 %v4584_v11 }
 0x396   :  { %v4023_v1 = vpop.f32.mrb[8].mxu1 }
 0x397   :  { %v4024_v2 = vpop.f32.mrb[9].mxu1 }
 0x398   :  { %v4025_v5 = vadd.f32 %v4024_v2, %v4023_v1  ;;  %v4026_v3 = vpop.f32.mrb[10].mxu1 }
 0x399   :  { %v4027_v7 = vpop.f32.mrb[11].mxu1 }
 0x39a   :  { %v2492_v17 = vadd.f32 %v4025_v5, %v1859_v14 }
 0x3b6   :  { %v4045_v15 = vpop.f32.mrb[12].mxu1 }
 0x3b7   :  { %v4046_v16 = vpop.f32.mrb[13].mxu1 }
 0x3b8   :  { %v4047_v18 = vadd.f32 %v4046_v16, %v4045_v15  ;;  %v4048_v19 = vpop.f32.mrb[14].mxu1 }
 0x3b9   :  { %v4049_v20 = vpop.f32.mrb[15].mxu1 }
 0x3ba   :  { %v2532_v21 = vadd.f32 %v4047_v18, %v2492_v17 }
 0x3bc   :  { %v2539_v22 = vmul.f32 0.01, %v2532_v21 }
 0x3be   :  { %v4922_v23 = vmax.f32 %v2532_v21, %v2539_v22 }
 0x3c0   :  { %v2559_v24 = vrot.slane %v4922_v23, 4  ;;  %v2570_v25 = vmul.f32 %v4922_v23, %v4922_v23 }
 0x3c2   :  { %v2560_v26 = vadd.f32 %v2559_v24, %v4922_v23  ;;  %v2583_v27 = vrot.slane %v2570_v25, 4 }
 0x3c4   :  { %v2561_v28 = vrot.slane %v2560_v26, 2  ;;  %v2584_v30 = vadd.f32 %v2583_v27, %v2570_v25 }
 0x3c6   :  { %v2562_v31 = vadd.f32 %v2561_v28, %v2560_v26  ;;  %v2585_v32 = vrot.slane %v2584_v30, 2 }
 0x3c8   :  { %v2563_v12 = vrot.slane %v2562_v31, 1  ;;  %v2586_v34 = vadd.f32 %v2585_v32, %v2584_v30 }
 0x3ca   :  { %v2564_v48 = vadd.f32 %v2563_v12, %v2562_v31  ;;  %v2587_v49 = vrot.slane %v2586_v34, 1 }
 0x3cc   :  { %v2567_v44 = vmul.f32 0.125, %v2564_v48  ;;  %v2588_v54 = vadd.f32 %v2587_v49, %v2586_v34 }
 0x3ce   :  { %v2591_v8 = vmul.f32 0.125, %v2588_v54  ;;  %v2594_v9 = vmul.f32 %v2567_v44, %v2567_v44 }
 0x3d0   :  { %v2597_v7 = vsub.f32 %v2591_v8, %v2594_v9  ;;  %v2546_v8 = vld [vmem:[#allocation5 + $0x42] ss:$8 sm:$0x7] }
 0x3d2   :  { %v2600_v20 = vmax.f32 %v2597_v7, 0.0  ;;  %v4587_v7 = vld [vmem:[#allocation2 + $0xb24] ss:$16 sps:$4 sm:$0xff]  }
 0x3d4   :  { %v2603_v30 = vadd.f32 1e-05, %v2600_v20  ;;  %v4605_v20 = vld [vmem:[#allocation2 + $0xbe4] ss:$16 sps:$4 sm:$0xff]  }
 0x3d6   :  { %v2450_v37 = vpop.f32.mrb[8].mxu0  ;;  %4654 = vrsqrt.f32 %v2603_v30  ;;  %v4611_v30 = vld [vmem:[#allocation2 + $0xc40] ss:$16 sps:$4 sm:$0xff]  }
 0x3d7   :  { %v4135_v35 = vadd.f32 %v2450_v37, %v1851_v42  ;;  %v2452_v38 = vpop.f32.mrb[9].mxu0 }
 0x3d8   :  { %v4136_v36 = vadd.f32 %v2452_v38, %v1855_v29  ;;  %v2454_v45 = vpop.f32.mrb[10].mxu0 }
 0x3d9   :  { %v2537_v46 = vmul.f32 0.01, %v4135_v35  ;;  %v2455_v47 = vpop.f32.mrb[11].mxu0 }
 0x3da   :  { %v2538_v50 = vmul.f32 0.01, %v4136_v36  ;;  %v2544_v47 = vld [vmem:[#allocation5 + $0x22] ss:$8 sm:$0x7] }
 0x3db   :  { %v4930_v39 = vmax.f32 %v4135_v35, %v2537_v46 }
 0x3dc   :  { %v4932_v51 = vmax.f32 %v4136_v36, %v2538_v50 }
 0x3dd   :  { %v2547_v52 = vrot.slane %v4930_v39, 4  ;;  %v2568_v53 = vmul.f32 %v4930_v39, %v4930_v39 }
 0x3de   :  { %v2553_v55 = vrot.slane %v4932_v51, 4  ;;  %v2569_v56 = vmul.f32 %v4932_v51, %v4932_v51 }
 0x3df   :  { %v2548_v57 = vadd.f32 %v2547_v52, %v4930_v39  ;;  %v2571_v58 = vrot.slane %v2568_v53, 4 }
 0x3e0   :  { %v2554_v60 = vadd.f32 %v2553_v55, %v4932_v51  ;;  %v2577_v62 = vrot.slane %v2569_v56, 4  ;;  %v4655_v34 = vpop.eup %4654 }
 0x3e1   :  { %v2549_v63 = vrot.slane %v2548_v57, 2  ;;  %v2572_v6 = vadd.f32 %v2571_v58, %v2568_v53  ;;  %v2624_v45 = vrot.slane %v4655_v34, %v4847_v33  ;;  %v4617_v34 = vld [vmem:[#allocation2 + $0xca0] ss:$16 sps:$4 sm:$0xff]  }
 0x3e2   :  { %v2555_v10 = vrot.slane %v2554_v60, 2  ;;  %v2578_v59 = vadd.f32 %v2577_v62, %v2569_v56 }
 0x3e3   :  { %v2550_v61 = vadd.f32 %v2549_v63, %v2548_v57  ;;  %v2573_v1 = vrot.slane %v2572_v6, 2 }
 0x3e4   :  { %v2556_v4 = vadd.f32 %v2555_v10, %v2554_v60  ;;  %v2579_v2 = vrot.slane %v2578_v59, 2 }
 0x3e5   :  { %v2551_v5 = vrot.slane %v2550_v61, 1  ;;  %v2574_v3 = vadd.f32 %v2573_v1, %v2572_v6 }
 0x3e6   :  { %v2557_v11 = vrot.slane %v2556_v4, 1  ;;  %v2580_v13 = vadd.f32 %v2579_v2, %v2578_v59 }
 0x3e7   :  { %v2552_v14 = vadd.f32 %v2551_v5, %v2550_v61  ;;  %v2575_v15 = vrot.slane %v2574_v3, 1  ;;  %v4582_v5 = vld [vmem:[#allocation2 + $0xb00] ss:$16 sps:$4 sm:$0xff]  }
 0x3e8   :  { %v2581_v16 = vrot.slane %v2580_v13, 1  ;;  %v2558_v17 = vadd.f32 %v2557_v11, %v2556_v4  ;;  %v4585_v11 = vld [vmem:[#allocation2 + $0xb20] ss:$16 sps:$4 sm:$0xff]  }
 0x3e9   :  { %v2565_v18 = vmul.f32 0.125, %v2552_v14  ;;  %v2576_v19 = vadd.f32 %v2575_v15, %v2574_v3  ;;  %v4588_v14 = vld [vmem:[#allocation2 + $0xb40] ss:$16 sps:$4 sm:$0xff]   ;;  %v4596_v15 = vld [vmem:[#allocation2 + $0xb84] ss:$16 sps:$4 sm:$0xff]  }
 0x3ea   :  { %v2582_v21 = vadd.f32 %v2581_v16, %v2580_v13  ;;  %v2566_v22 = vmul.f32 0.125, %v2558_v17  ;;  %v4590_v13 = vld [vmem:[#allocation2 + $0xb44] ss:$16 sps:$4 sm:$0xff]   ;;  %v4594_v16 = vld [vmem:[#allocation2 + $0xb80] ss:$16 sps:$4 sm:$0xff]  }
 0x3eb   :  { %v2589_v24 = vmul.f32 0.125, %v2576_v19  ;;  %v2592_v25 = vmul.f32 %v2565_v18, %v2565_v18  ;;  %v4599_v17 = vld [vmem:[#allocation2 + $0xba4] ss:$16 sps:$4 sm:$0xff]  }
 0x3ec   :  { %v2590_v26 = vmul.f32 0.125, %v2582_v21  ;;  %v2593_v27 = vmul.f32 %v2566_v22, %v2566_v22  ;;  %v4602_v19 = vld [vmem:[#allocation2 + $0xbc4] ss:$16 sps:$4 sm:$0xff]   ;;  %v4603_v21 = vld [vmem:[#allocation2 + $0xbe0] ss:$16 sps:$4 sm:$0xff]  }
 0x3ed   :  { %v2595_v28 = vsub.f32 %v2589_v24, %v2592_v25  ;;  %v4606_v24 = vld [vmem:[#allocation2 + $0xd00] ss:$16 sps:$4 sm:$0xff]  }
 0x3ee   :  { %v2596_v31 = vsub.f32 %v2590_v26, %v2593_v27  ;;  %v4607_v25 = vld [vmem:[#allocation2 + $0xc00] ss:$16 sps:$4 sm:$0xff]   ;;  %4051 = vmatprep.subr.bf16.mxu0 %v4606_v24 }
 0x3ef   :  { %v2598_v32 = vmax.f32 %v2595_v28, 0.0  ;;  %v4608_v26 = vld [vmem:[#allocation2 + $0xd20] ss:$16 sps:$4 sm:$0xff]   ;;  %4052 = vmatpush3.bf16.msra.mxu0 %v4607_v25 }
 0x3f0   :  { %v2599_v42 = vmax.f32 %v2596_v31, 0.0  ;;  %v4609_v27 = vld [vmem:[#allocation2 + $0xc20] ss:$16 sps:$4 sm:$0xff]   ;;  %4053 = vmatprep.subr.bf16.mxu0 %v4608_v26 }
 0x3f1   :  { %v2601_v29 = vadd.f32 1e-05, %v2598_v32  ;;  %v4610_v28 = vld [vmem:[#allocation2 + $0xd40] ss:$16 sps:$4 sm:$0xff]  }
 0x3f2   :  { %v2602_v12 = vadd.f32 1e-05, %v2599_v42  ;;  %v4612_v31 = vld [vmem:[#allocation2 + $0xd60] ss:$16 sps:$4 sm:$0xff]  }
 0x3f3   :  { %4656 = vrsqrt.f32 %v2601_v29  ;;  %4054 = vmatpush3.bf16.msra.mxu0 %v4609_v27  ;;  %v4613_v32 = vld [vmem:[#allocation2 + $0xc60] ss:$16 sps:$4 sm:$0xff]  }
 0x3f4   :  { %4658 = vrsqrt.f32 %v2602_v12  ;;  %4055 = vmatprep.subr.bf16.mxu0 %v4610_v28  ;;  %v4614_v42 = vld [vmem:[#allocation2 + $0xd80] ss:$16 sps:$4 sm:$0xff]  }
 0x3f5   :  { %v4615_v29 = vld [vmem:[#allocation2 + $0xc80] ss:$16 sps:$4 sm:$0xff]  }
 0x3f6   :  { %v4616_v12 = vld [vmem:[#allocation2 + $0xda0] ss:$16 sps:$4 sm:$0xff]  }
 0x3f7   :  { %4056 = vmatpush3.bf16.msra.mxu0 %v4611_v30 }
 0x3f8   :  { %4057 = vmatprep.subr.bf16.mxu0 %v4612_v31 }
 0x3fb   :  { %4058 = vmatpush3.bf16.msra.mxu0 %v4613_v32 }
 0x3fc   :  { %4059 = vmatprep.subr.bf16.mxu0 %v4614_v42 }
 0x3fd   :  { %v4657_v37 = vpop.eup %4656 }
 0x3fe   :  { %v4659_v35 = vpop.eup %4658 }
 0x3ff   :  { %v2610_v38 = vcombine.low %v4657_v37, %v4659_v35  ;;  %4060 = vmatpush3.bf16.msra.mxu0 %v4615_v29  ;;  %v4618_v37 = vld [vmem:[#allocation2 + $0xdc0] ss:$16 sps:$4 sm:$0xff]  }
 0x400   :  { %4061 = vmatprep.subr.bf16.mxu0 %v4616_v12  ;;  %v4619_v35 = vld [vmem:[#allocation2 + $0xcc0] ss:$16 sps:$4 sm:$0xff]  }
 0x401   :  { %v2617_v36 = vrot.slane %v2610_v38, %v4847_v33  ;;  %v4620_v38 = vld [vmem:[#allocation2 + $0xde0] ss:$16 sps:$4 sm:$0xff]  }
 0x402   :  { %v3095_v12 = vld [vmem:[#allocation5 + $0x23] ss:$8 sm:$0x3] }
 0x403   :  { %v2625_v46 = vcombine.low %v2617_v36, %v2624_v45  ;;  %4062 = vmatpush3.bf16.msra.mxu0 %v4617_v34  ;;  %v4621_v36 = vld [vmem:[#allocation2 + $0xce0] ss:$16 sps:$4 sm:$0xff]  }
 0x404   :  { %4063 = vmatprep.subr.bf16.mxu0 %v4618_v37  ;;  %v2753_v45 = vld [vmem:[#allocation5 + $0x3] ss:$8 sm:$0x3] }
 0x405   :  { %v2632_v48 = vrot.slane %v2625_v46, %v4847_v33  ;;  %v2761_v46 = vrot.slane %v2753_v45, %v4807_v40 }
 0x407   :  { %v2634_v49 = vmul.f32 %v2632_v48, %v2544_v47  ;;  %4064 = vmatpush3.bf16.msra.mxu0 %v4619_v35  ;;  %v2765_v47 = vrot.slane %v2753_v45, %v4813_v43 }
 0x408   :  { %4065 = vmatprep.subr.bf16.mxu0 %v4620_v38 }
 0x409   :  { %v2639_v50 = vrot.slane %v2634_v49, %v4807_v40  ;;  %v2643_v52 = vrot.slane %v2634_v49, %v4813_v43  ;;  %v2647_v53 = vrot.slane %v2634_v49, %v4810_v41 }
 0x40b   :  { %v2651_v54 = vmul.f32 %v2639_v50, %v2565_v18  ;;  %v2652_v55 = vmul.f32 %v2643_v52, %v2566_v22  ;;  %v2653_v56 = vmul.f32 %v2647_v53, %v2567_v44  ;;  %v2683_v57 = vmul.f32 %v2643_v52, %v4932_v51  ;;  %v4597_v18 = vld [vmem:[#allocation2 + $0xba0] ss:$16 sps:$4 sm:$0xff]   ;;  %4066 = vmatpush3.bf16.msra.mxu0 %v4621_v36 }
 0x40c   :  { %v2682_v58 = vmul.f32 %v2639_v50, %v4930_v39  ;;  %v2684_v44 = vmul.f32 %v2647_v53, %v4922_v23  ;;  %v4593_v23 = vld [vmem:[#allocation2 + $0xb64] ss:$16 sps:$4 sm:$0xff]  }
 0x40d   :  { %v2657_v60 = vcombine.low %v2651_v54, %v2652_v55  ;;  %v2671_v63 = vrot.slane %v2653_v56, %v4847_v33 }
 0x40f   :  { %v2664_v62 = vrot.slane %v2657_v60, %v4847_v33 }
 0x411   :  { %v2672_v6 = vcombine.low %v2664_v62, %v2671_v63 }
 0x413   :  { %v2679_v9 = vrot.slane %v2672_v6, %v4847_v33 }
 0x415   :  { %v2681_v10 = vsub.f32 %v2546_v8, %v2679_v9 }
 0x417   :  { %v2693_v59 = vrot.slane %v2681_v10, %v4813_v43  ;;  %v2689_v61 = vrot.slane %v2681_v10, %v4807_v40  ;;  %v2697_v51 = vrot.slane %v2681_v10, %v4810_v41  ;;  %v4591_v41 = vld [vmem:[#allocation2 + $0xb60] ss:$16 sps:$4 sm:$0xff]  }
 0x419   :  { %v2702_v1 = vadd.f32 %v2693_v59, %v2683_v57  ;;  %v2701_v39 = vadd.f32 %v2689_v61, %v2682_v58  ;;  %v2703_v4 = vadd.f32 %v2697_v51, %v2684_v44 }
 0x41b   :  { %v2755_v2 = vpack.c.bf16 %v2702_v1, %v2702_v1  ;;  %v2754_v3 = vpack.c.bf16 %v2701_v39, %v2701_v39  ;;  %v2756_v22 = vpack.c.bf16 %v2703_v4, %v2703_v4 }
 0x41d   :  { %3040 = vmatprep.mubr.bf16.mxu1 %v2755_v2 }
 0x41e   :  { %3041 = vmatmul.mubr.bf16.vlgmr.msra.gmra.mrb[16].mxu1 %v2754_v3 }
 0x41f   :  { %3050 = vmatpush1.bf16.msra.mxu1 %v4582_v5  ;;  %3081 = vmatprep.mubr.bf16.mxu1 %v4750_v0  ;;  %v4600_v0 = vld [vmem:[#allocation2 + $0xbc0] ss:$16 sps:$4 sm:$0xff]  }
 0x420   :  { %3051 = vmatprep.subr.bf16.mxu1 %v4587_v7 }
 0x423   :  { %3052 = vmatpush1.bf16.msra.mxu1 %v4585_v11 }
 0x424   :  { %3053 = vmatprep.subr.bf16.mxu1 %v4590_v13 }
 0x427   :  { %3054 = vmatpush1.bf16.msra.mxu1 %v4588_v14 }
 0x428   :  { %3055 = vmatprep.subr.bf16.mxu1 %v4593_v23 }
 0x42b   :  { %3056 = vmatpush1.bf16.msra.mxu1 %v4591_v41 }
 0x42c   :  { %3057 = vmatprep.subr.bf16.mxu1 %v4596_v15 }
 0x42f   :  { %3058 = vmatpush1.bf16.msra.mxu1 %v4594_v16 }
 0x430   :  { %3059 = vmatprep.subr.bf16.mxu1 %v4599_v17 }
 0x433   :  { %3060 = vmatpush1.bf16.msra.mxu1 %v4597_v18 }
 0x434   :  { %3061 = vmatprep.subr.bf16.mxu1 %v4602_v19 }
 0x437   :  { %3062 = vmatpush1.bf16.msra.mxu1 %v4600_v0 }
 0x438   :  { %3063 = vmatprep.subr.bf16.mxu1 %v4605_v20 }
 0x43b   :  { %3064 = vmatpush1.bf16.msra.mxu1 %v4603_v21 }
 0x43e   :  { %3082 = vmatmul.mubr.bf16.vlgmr.msra.gmra.mrb[16].mxu1 %v2756_v22 }
 0x511   :  { %v3083_v48 = vpop.f32.mrb[16].mxu1 }
 0x512   :  { %v4137_v49 = vadd.f32 %v3083_v48, %v2761_v46  ;;  %v3085_v50 = vpop.f32.mrb[17].mxu1 }
 0x513   :  { %v4138_v52 = vadd.f32 %v3085_v50, %v2765_v47  ;;  %v3087_v53 = vpop.f32.mrb[18].mxu1  ;;  %v3097_v50 = vld [vmem:[#allocation5 + $0x43] ss:$8 sm:$0x3] }
 0x514   :  { %v3090_v54 = vmul.f32 0.01, %v4137_v49  ;;  %v3088_v55 = vpop.f32.mrb[19].mxu1 }
 0x515   :  { %v3091_v56 = vmul.f32 0.01, %v4138_v52 }
 0x516   :  { %v3092_v57 = vmax.f32 %v4137_v49, %v3090_v54 }
 0x517   :  { %v3093_v58 = vmax.f32 %v4138_v52, %v3091_v56 }
 0x518   :  { %v3098_v60 = vrot.slane %v3092_v57, 4  ;;  %v3112_v62 = vmul.f32 %v3092_v57, %v3092_v57 }
 0x519   :  { %v3104_v63 = vrot.slane %v3093_v58, 4  ;;  %v3113_v6 = vmul.f32 %v3093_v58, %v3093_v58 }
 0x51a   :  { %v3099_v8 = vadd.f32 %v3098_v60, %v3092_v57  ;;  %v3114_v9 = vrot.slane %v3112_v62, 4 }
 0x51b   :  { %v3105_v10 = vadd.f32 %v3104_v63, %v3093_v58  ;;  %v3120_v59 = vrot.slane %v3113_v6, 4 }
 0x51c   :  { %v3100_v61 = vrot.slane %v3099_v8, 2  ;;  %v3115_v44 = vadd.f32 %v3114_v9, %v3112_v62  ;;  %v4628_v9 = vld [vmem:[#allocation2 + $0xec0] ss:$16 sps:$4 sm:$0xff]  }
 0x51d   :  { %v3106_v51 = vrot.slane %v3105_v10, 2  ;;  %v3121_v1 = vadd.f32 %v3120_v59, %v3113_v6  ;;  %v4622_v6 = vld [vmem:[#allocation2 + $0xe00] ss:$16 sps:$4 sm:$0xff]  }
 0x51e   :  { %v3101_v39 = vadd.f32 %v3100_v61, %v3099_v8  ;;  %v3116_v4 = vrot.slane %v3115_v44, 2  ;;  %v4627_v8 = vld [vmem:[#allocation2 + $0xea0] ss:$16 sps:$4 sm:$0xff]   ;;  %v3236_v61 = vld [vmem:[#allocation5 + $0x4] ss:$0 sm:$0xff] }
 0x51f   :  { %v3107_v2 = vadd.f32 %v3106_v51, %v3105_v10  ;;  %v3122_v5 = vrot.slane %v3121_v1, 2  ;;  %v4629_v10 = vld [vmem:[#allocation2 + $0xee0] ss:$16 sps:$4 sm:$0xff]  }
 0x520   :  { %v3102_v3 = vrot.slane %v3101_v39, 1  ;;  %v3117_v7 = vadd.f32 %v3116_v4, %v3115_v44 }
 0x521   :  { %v3108_v11 = vrot.slane %v3107_v2, 1  ;;  %v3123_v13 = vadd.f32 %v3122_v5, %v3121_v1 }
 0x522   :  { %v3103_v14 = vadd.f32 %v3102_v3, %v3101_v39  ;;  %v3118_v23 = vrot.slane %v3117_v7, 1 }
 0x523   :  { %v3124_v41 = vrot.slane %v3123_v13, 1  ;;  %v3109_v15 = vadd.f32 %v3108_v11, %v3107_v2 }
 0x524   :  { %v3110_v16 = vmul.f32 0.125, %v3103_v14  ;;  %v3119_v17 = vadd.f32 %v3118_v23, %v3117_v7 }
 0x525   :  { %v3125_v18 = vadd.f32 %v3124_v41, %v3123_v13  ;;  %v3111_v19 = vmul.f32 0.125, %v3109_v15 }
 0x526   :  { %v3126_v0 = vmul.f32 0.125, %v3119_v17  ;;  %v3128_v20 = vmul.f32 %v3110_v16, %v3110_v16 }
 0x527   :  { %v3127_v21 = vmul.f32 0.125, %v3125_v18  ;;  %v3129_v22 = vmul.f32 %v3111_v19, %v3111_v19 }
 0x528   :  { %v3130_v24 = vsub.f32 %v3126_v0, %v3128_v20 }
 0x529   :  { %v3131_v25 = vsub.f32 %v3127_v21, %v3129_v22 }
 0x52a   :  { %v3132_v26 = vmax.f32 %v3130_v24, 0.0 }
 0x52b   :  { %v3133_v27 = vmax.f32 %v3131_v25, 0.0 }
 0x52c   :  { %v3134_v28 = vadd.f32 1e-05, %v3132_v26 }
 0x52d   :  { %v3135_v30 = vadd.f32 1e-05, %v3133_v27  ;;  %v3377_v27 = vld [vmem:[#allocation5 + $0x24] ss:$0 sm:$0xff] }
 0x52e   :  { %4660 = vrsqrt.f32 %v3134_v28 }
 0x52f   :  { %4662 = vrsqrt.f32 %v3135_v30 }
 0x538   :  { %v4661_v31 = vpop.eup %4660 }
 0x539   :  { %v4663_v32 = vpop.eup %4662 }
 0x53a   :  { %v3140_v42 = vcombine.low %v4661_v31, %v4663_v32  ;;  %v3378_v31 = vld [vmem:[#allocation5 + $0x44] ss:$0 sm:$0xff] }
 0x53c   :  { %v3147_v29 = vrot.slane %v3140_v42, %v4847_v33 }
 0x53e   :  { %v3154_v34 = vrot.slane %v3147_v29, %v4847_v33 }
 0x540   :  { %v3156_v37 = vmul.f32 %v3154_v34, %v3095_v12 }
 0x542   :  { %v3161_v35 = vrot.slane %v3156_v37, %v4807_v40  ;;  %v3165_v38 = vrot.slane %v3156_v37, %v4813_v43  ;;  %v4630_v37 = vld [vmem:[#allocation2 + $0xf00] ss:$16 sps:$4 sm:$0xff]  }
 0x544   :  { %v3168_v36 = vmul.f32 %v3161_v35, %v3110_v16  ;;  %v3169_v45 = vmul.f32 %v3165_v38, %v3111_v19  ;;  %v3190_v46 = vmul.f32 %v3165_v38, %v3093_v58  ;;  %v3189_v47 = vmul.f32 %v3161_v35, %v3092_v57  ;;  %v4626_v57 = vld [vmem:[#allocation2 + $0xe80] ss:$16 sps:$4 sm:$0xff]  }
 0x545   :  { %v4752_v58 = vmov 0.0   ;;  %v4631_v35 = vld [vmem:[#allocation2 + $0xf20] ss:$16 sps:$4 sm:$0xff]  }
 0x546   :  { %v3172_v48 = vcombine.low %v3168_v36, %v3169_v45  ;;  %4091 = vmatprep.subr.bf16.mxu0 %v4752_v58  ;;  %4111 = vmatprep.subr.bf16.mxu1 %v4752_v58  ;;  %v4632_v38 = vld [vmem:[#allocation2 + $0xf40] ss:$16 sps:$4 sm:$0xff]  }
 0x547   :  { %4127 = vmatprep.mubr.msk.bf16.mxu1 %vm4753_vm0, %v4752_v58  ;;  %4112 = vmatpush3.bf16.msra.mxu1 %v4630_v37  ;;  %v4633_v36 = vld [vmem:[#allocation2 + $0xf60] ss:$16 sps:$4 sm:$0xff]  }
 0x548   :  { %v3179_v49 = vrot.slane %v3172_v48, %v4847_v33  ;;  %4113 = vmatprep.subr.bf16.mxu1 %v4752_v58  ;;  %v4634_v45 = vld [vmem:[#allocation2 + $0xf80] ss:$16 sps:$4 sm:$0xff]  }
 0x549   :  { %v4637_v48 = vld [vmem:[#allocation2 + $0xfe0] ss:$16 sps:$4 sm:$0xff]  }
 0x54a   :  { %v3186_v52 = vrot.slane %v3179_v49, %v4847_v33  ;;  %v4623_v33 = vld [vmem:[#allocation2 + $0xe20] ss:$16 sps:$4 sm:$0xff]   ;;  %v3420_v49 = vld [vmem:[#allocation5 + $0x5] ss:$0 sm:$0xff] }
 0x54b   :  { %4114 = vmatpush3.bf16.msra.mxu1 %v4631_v35 }
 0x54c   :  { %v3188_v53 = vsub.f32 %v3097_v50, %v3186_v52  ;;  %4115 = vmatprep.subr.bf16.mxu1 %v4752_v58 }
 0x54e   :  { %v3199_v54 = vrot.slane %v3188_v53, %v4813_v43  ;;  %v3195_v55 = vrot.slane %v3188_v53, %v4807_v40  ;;  %v4624_v43 = vld [vmem:[#allocation2 + $0xe40] ss:$16 sps:$4 sm:$0xff]  }
 0x54f   :  { %v4625_v40 = vld [vmem:[#allocation2 + $0xe60] ss:$16 sps:$4 sm:$0xff]   ;;  %4116 = vmatpush3.bf16.msra.mxu1 %v4632_v38 }
 0x550   :  { %v3203_v56 = vadd.f32 %v3199_v54, %v3190_v46  ;;  %v3202_v60 = vadd.f32 %v3195_v55, %v3189_v47  ;;  %4117 = vmatprep.subr.bf16.mxu1 %v4752_v58  ;;  %v4635_v46 = vld [vmem:[#allocation2 + $0xfa0] ss:$16 sps:$4 sm:$0xff]  }
 0x551   :  { %v4636_v47 = vld [vmem:[#allocation2 + $0xfc0] ss:$16 sps:$4 sm:$0xff]  }
 0x552   :  { %v3238_v62 = vpack.c.bf16 %v3203_v56, %v3203_v56  ;;  %v3237_v63 = vpack.c.bf16 %v3202_v60, %v3202_v60 }
 0x553   :  { %4118 = vmatpush3.bf16.msra.mxu1 %v4633_v36 }
 0x554   :  { %3367 = vmatprep.mubr.bf16.mxu0 %v3238_v62  ;;  %4119 = vmatprep.subr.bf16.mxu1 %v4752_v58 }
 0x555   :  { %3368 = vmatmul.mubr.bf16.vlgmr.msra.gmra.mrb[12].mxu0 %v3237_v63 }
 0x556   :  { %4092 = vmatpush3.bf16.msra.mxu0 %v4622_v6  ;;  %4107 = vmatprep.mubr.msk.bf16.mxu0 %vm4753_vm0, %v4752_v58 }
 0x557   :  { %4093 = vmatprep.subr.bf16.mxu0 %v4752_v58  ;;  %4120 = vmatpush3.bf16.msra.mxu1 %v4634_v45 }
 0x558   :  { %4121 = vmatprep.subr.bf16.mxu1 %v4752_v58 }
 0x55a   :  { %4094 = vmatpush3.bf16.msra.mxu0 %v4623_v33 }
 0x55b   :  { %4095 = vmatprep.subr.bf16.mxu0 %v4752_v58  ;;  %4122 = vmatpush3.bf16.msra.mxu1 %v4635_v46 }
 0x55c   :  { %4123 = vmatprep.subr.bf16.mxu1 %v4752_v58 }
 0x55e   :  { %4096 = vmatpush3.bf16.msra.mxu0 %v4624_v43 }
 0x55f   :  { %4097 = vmatprep.subr.bf16.mxu0 %v4752_v58  ;;  %4124 = vmatpush3.bf16.msra.mxu1 %v4636_v47 }
 0x560   :  { %4125 = vmatprep.subr.bf16.mxu1 %v4752_v58 }
 0x562   :  { %4098 = vmatpush3.bf16.msra.mxu0 %v4625_v40 }
 0x563   :  { %4099 = vmatprep.subr.bf16.mxu0 %v4752_v58  ;;  %4126 = vmatpush3.bf16.msra.mxu1 %v4637_v48 }
 0x566   :  { %4100 = vmatpush3.bf16.msra.mxu0 %v4626_v57 }
 0x567   :  { %4101 = vmatprep.subr.bf16.mxu0 %v4752_v58 }
 0x56a   :  { %4102 = vmatpush3.bf16.msra.mxu0 %v4627_v8 }
 0x56b   :  { %4103 = vmatprep.subr.bf16.mxu0 %v4752_v58 }
 0x56e   :  { %4104 = vmatpush3.bf16.msra.mxu0 %v4628_v9 }
 0x56f   :  { %4105 = vmatprep.subr.bf16.mxu0 %v4752_v58 }
 0x572   :  { %4106 = vmatpush3.bf16.msra.mxu0 %v4629_v10 }
 0x628   :  { %v4067_v59 = vpop.f32.mrb[12].mxu0 }
 0x629   :  { %v4068_v44 = vpop.f32.mrb[13].mxu0 }
 0x62a   :  { %v4069_v51 = vadd.f32 %v4068_v44, %v4067_v59  ;;  %v4070_v1 = vpop.f32.mrb[14].mxu0 }
 0x62b   :  { %v4071_v39 = vpop.f32.mrb[15].mxu0 }
 0x62c   :  { %v3370_v4 = vadd.f32 %v4069_v51, %v3236_v61 }
 0x62e   :  { %v3375_v2 = vmul.f32 0.01, %v3370_v4 }
 0x630   :  { %v3376_v5 = vmax.f32 %v3370_v4, %v3375_v2 }
 0x632   :  { %v3379_v3 = vrot.slane %v3376_v5, 4  ;;  %v3386_v7 = vmul.f32 %v3376_v5, %v3376_v5 }
 0x634   :  { %v3380_v11 = vadd.f32 %v3379_v3, %v3376_v5  ;;  %v3387_v13 = vrot.slane %v3386_v7, 4 }
 0x636   :  { %v3381_v14 = vrot.slane %v3380_v11, 2  ;;  %v3388_v23 = vadd.f32 %v3387_v13, %v3386_v7 }
 0x638   :  { %v3382_v41 = vadd.f32 %v3381_v14, %v3380_v11  ;;  %v3389_v15 = vrot.slane %v3388_v23, 2  ;;  %v3513_v11 = vld [vmem:[#allocation5 + $0x45] ss:$0 sm:$0xff] }
 0x63a   :  { %v3390_v16 = vadd.f32 %v3389_v15, %v3388_v23  ;;  %v3383_v17 = vrot.slane %v3382_v41, 1 }
 0x63c   :  { %v3391_v18 = vrot.slane %v3390_v16, 1  ;;  %v3384_v19 = vadd.f32 %v3383_v17, %v3382_v41 }
 0x63e   :  { %v3392_v0 = vadd.f32 %v3391_v18, %v3390_v16  ;;  %v3385_v20 = vmul.f32 0.125, %v3384_v19  ;;  %v3555_v16 = vld [vmem:[#allocation5 + $0x6] ss:$0 sm:$0xff] }
 0x640   :  { %v3393_v21 = vmul.f32 0.125, %v3392_v0  ;;  %v3394_v22 = vmul.f32 %v3385_v20, %v3385_v20 }
 0x642   :  { %v3395_v24 = vsub.f32 %v3393_v21, %v3394_v22 }
 0x644   :  { %v3396_v25 = vmax.f32 %v3395_v24, 0.0 }
 0x646   :  { %v3397_v26 = vadd.f32 1e-05, %v3396_v25 }
 0x648   :  { %4664 = vrsqrt.f32 %v3397_v26 }
 0x652   :  { %v4665_v28 = vpop.eup %4664 }
 0x653   :  { %v3399_v30 = vmul.f32 %v4665_v28, %v3377_v27 }
 0x655   :  { %v3400_v32 = vmul.f32 %v3399_v30, %v3385_v20  ;;  %v3402_v29 = vmul.f32 %v3399_v30, %v3376_v5  ;;  %v3512_v5 = vld [vmem:[#allocation5 + $0x25] ss:$0 sm:$0xff] }
 0x657   :  { %v3401_v42 = vsub.f32 %v3378_v31, %v3400_v32 }
 0x659   :  { %v3403_v12 = vadd.f32 %v3402_v29, %v3401_v42 }
 0x65b   :  { %v3421_v34 = vpack.c.bf16 %v3403_v12, %v3403_v12 }
 0x65d   :  { %4108 = vmatmul.mubr.bf16.vlgmr.msra.gmra.mrb[16].mxu0 %v3421_v34 }
 0x730   :  { %v3504_v50 = vpop.f32.mrb[16].mxu0 }
 0x731   :  { %v3505_v52 = vadd.f32 %v3504_v50, %v3420_v49  ;;  %v4109_v53 = vpop.f32.mrb[17].mxu0 }
 0x732   :  { %v3507_v54 = vpop.f32.mrb[18].mxu0 }
 0x733   :  { %v3510_v55 = vmul.f32 0.01, %v3505_v52  ;;  %v4110_v56 = vpop.f32.mrb[19].mxu0 }
 0x735   :  { %v3511_v60 = vmax.f32 %v3505_v52, %v3510_v55 }
 0x737   :  { %v3514_v62 = vrot.slane %v3511_v60, 4  ;;  %v3521_v63 = vmul.f32 %v3511_v60, %v3511_v60 }
 0x739   :  { %v3515_v6 = vadd.f32 %v3514_v62, %v3511_v60  ;;  %v3522_v33 = vrot.slane %v3521_v63, 4 }
 0x73b   :  { %v3516_v43 = vrot.slane %v3515_v6, 2  ;;  %v3523_v40 = vadd.f32 %v3522_v33, %v3521_v63 }
 0x73d   :  { %v3517_v57 = vadd.f32 %v3516_v43, %v3515_v6  ;;  %v3524_v8 = vrot.slane %v3523_v40, 2 }
 0x73f   :  { %v3518_v9 = vrot.slane %v3517_v57, 1  ;;  %v3525_v10 = vadd.f32 %v3524_v8, %v3523_v40 }
 0x741   :  { %v3526_v58 = vrot.slane %v3525_v10, 1  ;;  %v3519_v59 = vadd.f32 %v3518_v9, %v3517_v57 }
 0x743   :  { %v3527_v61 = vadd.f32 %v3526_v58, %v3525_v10  ;;  %v3520_v44 = vmul.f32 0.125, %v3519_v59 }
 0x745   :  { %v3528_v51 = vmul.f32 0.125, %v3527_v61  ;;  %v3529_v1 = vmul.f32 %v3520_v44, %v3520_v44 }
 0x747   :  { %v3530_v39 = vsub.f32 %v3528_v51, %v3529_v1 }
 0x749   :  { %v3531_v4 = vmax.f32 %v3530_v39, 0.0 }
 0x74b   :  { %v3532_v2 = vadd.f32 1e-05, %v3531_v4 }
 0x74d   :  { %4666 = vrsqrt.f32 %v3532_v2 }
 0x757   :  { %v4667_v3 = vpop.eup %4666 }
 0x758   :  { %v3534_v7 = vmul.f32 %v4667_v3, %v3512_v5 }
 0x75a   :  { %v3535_v13 = vmul.f32 %v3534_v7, %v3520_v44  ;;  %v3537_v23 = vmul.f32 %v3534_v7, %v3511_v60 }
 0x75c   :  { %v3536_v14 = vsub.f32 %v3513_v11, %v3535_v13 }
 0x75e   :  { %v3538_v41 = vadd.f32 %v3537_v23, %v3536_v14 }
 0x760   :  { %v3556_v15 = vpack.c.bf16 %v3538_v41, %v3538_v41 }
 0x762   :  { %4128 = vmatmul.mubr.bf16.vlgmr.msra.gmra.mrb[20].mxu1 %v3556_v15 }
 0x835   :  { %v3639_v17 = vpop.f32.mrb[20].mxu1 }
 0x836   :  { %v3640_v18 = vadd.f32 %v3639_v17, %v3555_v16  ;;  %v4129_v19 = vpop.f32.mrb[21].mxu1 }
 0x837   :  { %v3642_v0 = vpop.f32.mrb[22].mxu1 }
 0x838   :  { %3645 = vmax.xlane.f32.xlu0 %v3640_v18  ;;  %v4130_v20 = vpop.f32.mrb[23].mxu1 }
 0x8c5   :  { %v3646_v21 = vpop.xlane.xlu0 %3645 }
 0x8c6   :  { %v3647_v22 = vsub.f32 %v3640_v18, %v3646_v21 }
 0x8c8   :  { %v3648_v24 = vmul.f32 1.442695, %v3647_v22 }
 0x8ca   :  { %4668 = vpow2.f32 %v3648_v24 }
 0x8d4   :  { %v4669_v25 = vpop.eup %4668 }
 0x8d5   :  { %3650 = vadd.xlane.f32.xlu0 %v4669_v25 }
 0x962   :  { %v3651_v26 = vpop.xlane.xlu0 %3650 }
 0x963   :  { %4670 = vrcp.f32 %v3651_v26 }
 0x96d   :  { %v4671_v27 = vpop.eup %4670 }
 0x96e   :  { %v3653_v28 = vmul.f32 %v4671_v27, %v4669_v25 }
 0x970   :  { %3654 = vst [vmem:[#allocation7] sm:$0xff] %v3653_v28 }
 0x971   :  { %4727 = shalt.err (!%p4724_p6)
}
 0x972   :  { %s4728_s17 = scalar_lea.hbm %s5001_s3, 128 }
 0x973   :  { %p4729_p7 = scmp.ne.s32.totalorder %s5001_s3, %s4728_s17  ;;  %p4732_p8 = scmp.lt.u32.totalorder %s4728_s17, %s5001_s3 }
 0x975   :  { %p4734_p9 = pnand %p4732_p8, %p4729_p7 }
 0x977   :  { %4737 = shalt.err (!%p4734_p9)
}
 0x978   :  { %3664 = dma.vmem_to_hbm [thread:$0]  %s3662_s13, 128, %s5001_s3, [#allocation4]  }
 0x979   :  { %4742 = dma.done.wait [#allocation4], 128  }
 0x97a   :  { %4743 = vsyncadd [#allocation4], 4294967168 }
 0x97b   :  { %3668 = vsyncpa [#allocation3], 1 }
 0x97c   :  { %3669 = vsyncpa [#allocation6], 1 }
 0x97d   :  { %3670 = vsyncpa [#allocation4], 1 }

</bundles_post_ra>
